<compile_context>
chip_gen: v6e
topology: v6e:2x2x1
jax: 0.10.0
libtpu: 0.0.40
codegen_flags: <defaults>
</compile_context>

<pallas_src>
import functools

import jax
import jax.numpy as jnp
from jax.experimental import pallas as pl
from jax.experimental.pallas import tpu as pltpu

D_MODEL = 32          # small synthetic d_model (module default is 256)
NHEAD = 8             # config.nhead
LAYER_NUM = 2         # layer_names = ['self', 'cross'] * 2  -> 4 encoder layers
LN_EPS = 1e-5         # nn.LayerNorm default eps
ATTN_EPS = 1e-6       # LinearAttention eps


# ----------------------------------------------------------------------------
# Helpers: VMEM budget, tile picking, head mask.
# ----------------------------------------------------------------------------
def _vmem_budget_bytes():
    """Scoped-VMEM budget sized per chip (v7x: 64 MiB physical, v5e/v6e: 128 MiB)."""
    try:
        info = pltpu.get_tpu_info()
        cap = int(getattr(info, "vmem_capacity_bytes", 0)) or (64 << 20)
    except Exception:
        cap = 64 << 20
    # leave headroom: ~45 MiB on v7x, ~90 MiB (capped 100 MiB) on v5e/v6e.
    return min(int(cap * 0.7), 100 << 20)


def _pick_tile(n, target):
    """Largest divisor of n that is <= target and a multiple of 8 (else full n)."""
    if n <= target:
        return n
    for d in range(min(target, n), 7, -1):
        if n % d == 0 and d % 8 == 0:
            return d
    return n


def make_head_mask(d_model, nhead):
    """(C, C) f32, 1 where both channels belong to the same head (built host-side once)."""
    dh = d_model // nhead
    r = jnp.arange(d_model) // dh
    return (r[:, None] == r[None, :]).astype(jnp.float32)


# ----------------------------------------------------------------------------
# Phase A kernel: accumulate per-head K^T V and K-sum over S tiles.
# ----------------------------------------------------------------------------
def _kv_accum_kernel(src_ref, wkv_ref, hmask_ref, rhs_ref, kv_acc, kc_acc,
                     *, inv_s, fast):
    C = hmask_ref.shape[0]
    s = pl.program_id(1)

    @pl.when(s == 0)
    def _init():
        kv_acc[...] = jnp.zeros_like(kv_acc)
        kc_acc[...] = jnp.zeros_like(kc_acc)

    dot_dt = jnp.bfloat16 if fast else jnp.float32
    src = src_ref[...]                                           # (TS, C) f32
    kv = jnp.dot(src.astype(dot_dt), wkv_ref[...],
                 preferred_element_type=jnp.float32)             # (TS, 2C) = [k | v]
    k = kv[:, :C]
    v = kv[:, C:]
    # elu(k) + 1  ==  where(k > 0, k + 1, exp(min(k, 0)))   (overflow-safe)
    K = jnp.where(k > 0, k + 1.0, jnp.exp(jnp.minimum(k, 0.0)))

    Kd = K.astype(dot_dt)
    # K^T V  -> (C, C) accumulator
    kv_acc[...] += jax.lax.dot_general(Kd, v.astype(dot_dt),
                                       (((0,), (0,)), ((), ())),
                                       preferred_element_type=jnp.float32)
    # K^T 1  -> (C, 1) ksum column (matmul-by-ones: cross-sublane reduce on the MXU)
    ones = jnp.ones((src.shape[0], 1), dot_dt)
    kc_acc[...] += jax.lax.dot_general(Kd, ones,
                                       (((0,), (0,)), ((), ())),
                                       preferred_element_type=jnp.float32)

    @pl.when(s == pl.num_programs(1) - 1)
    def _finalize():
        hm = hmask_ref[...]
        # fused RHS so Phase B gets numerator AND denominator from ONE matmul:
        #   rhs[:, :C] = hmask * (K^T V) / S      (block-diagonal per head)
        #   rhs[:, C:] = hmask * ksum_col / S     (per-head denominator, replicated per lane)
        rhs_ref[:, :C] = (kv_acc[...] * hm * inv_s).astype(rhs_ref.dtype)
        rhs_ref[:, C:] = (kc_acc[...] * hm * inv_s).astype(rhs_ref.dtype)


# ----------------------------------------------------------------------------
# Phase B kernel: attention + merge + LN + MLP + residual, per L tile.
# ----------------------------------------------------------------------------
def _attn_mlp_kernel(x_ref, rhs_ref, wq_ref, wm_ref, w1a_ref, w1b_ref, w2_ref,
                     g1_ref, b1_ref, g2_ref, b2_ref, o_ref, *, eps_over_s, fast):
    C = x_ref.shape[-1]
    dot_dt = jnp.bfloat16 if fast else jnp.float32

    def mm(a, b):  # MXU matmul, f32 accumulation
        return jnp.dot(a.astype(dot_dt), b.astype(dot_dt),
                       preferred_element_type=jnp.float32)

    def layer_norm(t, g, beta):  # two-pass variance (numerically stable)
        mu = jnp.mean(t, axis=-1, keepdims=True)
        d = t - mu
        var = jnp.mean(d * d, axis=-1, keepdims=True)
        return d * jax.lax.rsqrt(var + LN_EPS) * g + beta

    x = x_ref[...]                                               # (TL, C) f32
    q = mm(x, wq_ref[...])
    Q = jnp.where(q > 0, q + 1.0, jnp.exp(jnp.minimum(q, 0.0)))

    nd = mm(Q, rhs_ref[...])                                     # (TL, 2C): [num | den]
    num = nd[:, :C]
    den = nd[:, C:] + eps_over_s
    z = pl.reciprocal(den, approx=True) if fast else 1.0 / den
    msg = mm(num * z, wm_ref[...])
    msg = layer_norm(msg, g1_ref[...], b1_ref[...])

    # MLP on concat([x, message]) with W1 pre-split -> no lane concat in-kernel
    h1 = jnp.maximum(mm(x, w1a_ref[...]) + mm(msg, w1b_ref[...]), 0.0)
    m = layer_norm(mm(h1, w2_ref[...]), g2_ref[...], b2_ref[...])

    o_ref[...] = x + m


# ----------------------------------------------------------------------------
# One encoder layer = Phase A + Phase B pallas_calls.
# ----------------------------------------------------------------------------
def encoder_layer(x, src, p, hmask, *, swap_halves=False, fast=False):
    B, L, C = x.shape
    Bs, S, Cs = src.shape
    assert C == Cs and Bs == B
    if swap_halves:
        assert B % 2 == 0, "swap_halves requires the fused (2N) batch"

    vmem_budget = _vmem_budget_bytes()
    # rows per tile sized so double-buffered activations + intermediates fit VMEM
    # (larger tiles on 128 MiB chips than on v7x's 64 MiB).
    row_target = int(max(128, min(vmem_budget // (128 * C), 2048)))
    w = p["bf16"] if fast else p["f32"]
    w_item = 2 if fast else 4
    rhs_dtype = jnp.bfloat16 if fast else jnp.float32
    rhs_item = 2 if fast else 4

    # ------------------ Phase A: per-batch fused KV / ksum RHS ------------------
    TS = _pick_tile(S, row_target)
    n_s = S // TS
    half = B // 2
    if swap_halves:
        src_map = lambda b, s: ((b + half) % B, s, 0)   # cross: zero-copy stream swap
    else:
        src_map = lambda b, s: (b, s, 0)

    flops_a = int(6 * B * S * C * C)
    bytes_a = int(4 * B * S * C + w_item * C * 2 * C + 4 * C * C
                  + rhs_item * B * C * 2 * C)

    rhs = pl.pallas_call(
        functools.partial(_kv_accum_kernel, inv_s=1.0 / S, fast=fast),
        out_shape=jax.ShapeDtypeStruct((B, C, 2 * C), rhs_dtype),
        grid_spec=pltpu.PrefetchScalarGridSpec(
            num_scalar_prefetch=0,
            grid=(B, n_s),
            in_specs=[
                pl.BlockSpec((None, TS, C), src_map),            # src S-tile
                pl.BlockSpec((C, 2 * C), lambda b, s: (0, 0)),   # wkv (VMEM-resident)
                pl.BlockSpec((C, C), lambda b, s: (0, 0)),       # head mask (resident)
            ],
            out_specs=pl.BlockSpec((None, C, 2 * C), lambda b, s: (b, 0, 0)),
            scratch_shapes=[pltpu.VMEM((C, C), jnp.float32),     # KV accumulator
                            pltpu.VMEM((C, 1), jnp.float32)],    # ksum column accumulator
        ),
        compiler_params=pltpu.CompilerParams(
            dimension_semantics=("parallel", "arbitrary"),
            vmem_limit_bytes=vmem_budget),
        cost_estimate=pl.CostEstimate(flops=flops_a,
                                      transcendentals=int(B * S * C),
                                      bytes_accessed=bytes_a),
    )(src, w["wkv"], hmask)

    # ------------------ Phase B: attention + merge + MLP + residual ------------------
    TL = _pick_tile(L, row_target)
    n_l = L // TL

    flops_b = int(20 * B * L * C * C)
    weight_bytes = w_item * (2 * C * C + 2 * C * 2 * C + 2 * C * C) + 4 * 4 * C
    bytes_b = int(8 * B * L * C + rhs_item * B * C * 2 * C + weight_bytes)

    out = pl.pallas_call(
        functools.partial(_attn_mlp_kernel, eps_over_s=ATTN_EPS / S, fast=fast),
        out_shape=jax.ShapeDtypeStruct((B, L, C), jnp.float32),
        grid_spec=pltpu.PrefetchScalarGridSpec(
            num_scalar_prefetch=0,
            grid=(B, n_l),
            in_specs=[
                pl.BlockSpec((None, TL, C), lambda b, l: (b, l, 0)),      # x L-tile
                pl.BlockSpec((None, C, 2 * C), lambda b, l: (b, 0, 0)),   # fused KV RHS
                pl.BlockSpec((C, C), lambda b, l: (0, 0)),                # wq
                pl.BlockSpec((C, C), lambda b, l: (0, 0)),                # w_merge
                pl.BlockSpec((C, 2 * C), lambda b, l: (0, 0)),            # mlp W1 (x half)
                pl.BlockSpec((C, 2 * C), lambda b, l: (0, 0)),            # mlp W1 (msg half)
                pl.BlockSpec((2 * C, C), lambda b, l: (0, 0)),            # mlp W2
                pl.BlockSpec((1, C), lambda b, l: (0, 0)),                # norm1 gamma
                pl.BlockSpec((1, C), lambda b, l: (0, 0)),                # norm1 beta
                pl.BlockSpec((1, C), lambda b, l: (0, 0)),                # norm2 gamma
                pl.BlockSpec((1, C), lambda b, l: (0, 0)),                # norm2 beta
            ],
            out_specs=pl.BlockSpec((None, TL, C), lambda b, l: (b, l, 0)),
        ),
        compiler_params=pltpu.CompilerParams(
            dimension_semantics=("parallel", "parallel"),
            vmem_limit_bytes=vmem_budget),
        cost_estimate=pl.CostEstimate(flops=flops_b,
                                      transcendentals=int(B * L * (2 * C + 2)),
                                      bytes_accessed=bytes_b),
    )(x, rhs, w["wq"], w["wm"], w["w1a"], w["w1b"], w["w2"],
      p["g1"], p["b1"], p["g2"], p["b2"])
    return out


# ----------------------------------------------------------------------------
# FeatureAttention forward (flag=False path of the PyTorch module).
# ----------------------------------------------------------------------------
def feature_attention(x0, x1, layer_params, *, layer_names, nhead=NHEAD, fast=False):
    C = x0.shape[-1]
    hmask = make_head_mask(C, nhead)
    if x0.shape == x1.shape:
        # Fuse both streams along batch -> both updates use pre-update values,
        # matching the PyTorch aliasing.  Cross-layer source swap happens inside the
        # kernel's src index_map (no host-side re-concatenate of swapped halves).
        N = x0.shape[0]
        x = jnp.concatenate([x0, x1], axis=0)          # (2N, L, C), once per forward
        for p, name in zip(layer_params, layer_names):
            if name not in ("self", "cross"):
                raise KeyError(name)
            x = encoder_layer(x, x, p, hmask,
                              swap_halves=(name == "cross"), fast=fast)
        return x[:N], x[N:]
    # fallback: different token counts -> two calls per layer, no batch fusion
    for p, name in zip(layer_params, layer_names):
        if name == "self":
            s0, s1 = x0, x1
        elif name == "cross":
            s0, s1 = x1, x0
        else:
            raise KeyError(name)
        x0, x1 = (encoder_layer(x0, s0, p, hmask, fast=fast),
                  encoder_layer(x1, s1, p, hmask, fast=fast))
    return x0, x1


# ----------------------------------------------------------------------------
# Deterministic parameter init (xavier_uniform for dim>1 params, LayerNorm = 1/0).
# Kernel views are pre-fused / pre-split and pre-cast (f32 and bf16) host-side.
# ----------------------------------------------------------------------------
def _xavier_uniform(key, fan_in, fan_out):
    bound = (6.0 / (fan_in + fan_out)) ** 0.5
    return jax.random.uniform(key, (fan_in, fan_out), jnp.float32, -bound, bound)


def init_layer_params(key, d_model):
    C = d_model
    ks = jax.random.split(key, 6)
    wq = _xavier_uniform(ks[0], C, C)
    wk = _xavier_uniform(ks[1], C, C)
    wv = _xavier_uniform(ks[2], C, C)
    wm = _xavier_uniform(ks[3], C, C)
    w1 = _xavier_uniform(ks[4], 2 * C, 2 * C)
    w2 = _xavier_uniform(ks[5], 2 * C, C)
    f32_views = {
        "wq": wq,
        "wkv": jnp.concatenate([wk, wv], axis=1),    # fused (C, 2C) k|v projection
        "wm": wm,
        "w1a": w1[:C], "w1b": w1[C:],                # pre-split MLP W1
        "w2": w2,
    }
    bf16_views = {k: v.astype(jnp.bfloat16) for k, v in f32_views.items()}
    return {
        "raw": {"wq": wq, "wk": wk, "wv": wv, "wm": wm, "w1": w1, "w2": w2},
        "f32": f32_views,
        "bf16": bf16_views,
        "g1": jnp.ones((1, C), jnp.float32), "b1": jnp.zeros((1, C), jnp.float32),
        "g2": jnp.ones((1, C), jnp.float32), "b2": jnp.zeros((1, C), jnp.float32),
    }


# ----------------------------------------------------------------------------
# Pure-JAX reference (faithful to the PyTorch module, incl. the v/S ... *S scaling).
# ----------------------------------------------------------------------------
def _encoder_layer_ref(x, src, p):
    raw = p["raw"]
    N, L, C = x.shape
    S = src.shape[1]
    H, Dh = NHEAD, C // NHEAD
    q = (x @ raw["wq"]).reshape(N, L, H, Dh)
    k = (src @ raw["wk"]).reshape(N, S, H, Dh)
    v = (src @ raw["wv"]).reshape(N, S, H, Dh)
    Q = jnp.where(q > 0, q, jnp.exp(q) - 1.0) + 1.0
    K = jnp.where(k > 0, k, jnp.exp(k) - 1.0) + 1.0
    v = v / S
    KV = jnp.einsum("nshd,nshv->nhdv", K, v)
    Z = 1.0 / (jnp.einsum("nlhd,nhd->nlh", Q, K.sum(axis=1)) + ATTN_EPS)
    msg = jnp.einsum("nlhd,nhdv->nlhv", Q, KV) * Z[..., None] * S
    msg = msg.reshape(N, L, C) @ raw["wm"]
    mu = msg.mean(-1, keepdims=True)
    var = ((msg - mu) ** 2).mean(-1, keepdims=True)
    msg = (msg - mu) / jnp.sqrt(var + LN_EPS) * p["g1"] + p["b1"]
    cat = jnp.concatenate([x, msg], axis=-1)
    m = jnp.maximum(cat @ raw["w1"], 0.0) @ raw["w2"]
    mu = m.mean(-1, keepdims=True)
    var = ((m - mu) ** 2).mean(-1, keepdims=True)
    m = (m - mu) / jnp.sqrt(var + LN_EPS) * p["g2"] + p["b2"]
    return x + m


def feature_attention_ref(x0, x1, layer_params, layer_names):
    for p, name in zip(layer_params, layer_names):
        if name == "self":
            s0, s1 = x0, x1
        elif name == "cross":
            s0, s1 = x1, x0
        else:
            raise KeyError(name)
        x0, x1 = _encoder_layer_ref(x0, s0, p), _encoder_layer_ref(x1, s1, p)
    return x0, x1


if __name__ == "__main__":
    key = jax.random.PRNGKey(0)
    k0, k1, kp = jax.random.split(key, 3)

    N, L = 2, 64
    x0 = jax.random.normal(k0, (N, L, D_MODEL), jnp.float32)
    x1 = jax.random.normal(k1, (N, L, D_MODEL), jnp.float32)

    layer_names = ["self", "cross"] * LAYER_NUM
    pkeys = jax.random.split(kp, len(layer_names))
    layer_params = [init_layer_params(k, D_MODEL) for k in pkeys]

    # --- Pallas forward, precise f32 path ---
    fwd = jax.jit(functools.partial(feature_attention,
                                    layer_names=layer_names, fast=False))
    y0, y1 = fwd(x0, x1, layer_params)
    jax.block_until_ready((y0, y1))

    # --- pure-JAX reference check ---
    r0, r1 = feature_attention_ref(x0, x1, layer_params, layer_names)
    assert jnp.allclose(y0, r0, rtol=2e-3, atol=2e-3), "x0 mismatch vs reference"
    assert jnp.allclose(y1, r1, rtol=2e-3, atol=2e-3), "x1 mismatch vs reference"

    # --- fast path: bf16 MXU inputs (weights pre-cast host-side) + approx reciprocal ---
    fwd_fast = jax.jit(functools.partial(feature_attention,
                                         layer_names=layer_names, fast=True))
    z0, z1 = fwd_fast(x0, x1, layer_params)
    jax.block_until_ready((z0, z1))
    assert bool(jnp.all(jnp.isfinite(z0))) and bool(jnp.all(jnp.isfinite(z1)))
    assert float(jnp.mean(jnp.abs(z0 - r0))) < 0.1, "bf16 fast path diverged (x0)"
    assert float(jnp.mean(jnp.abs(z1 - r1))) < 0.1, "bf16 fast path diverged (x1)"

    print("KERNEL_OK")
</pallas_src>

<mosaic_0001>
module attributes {stable_mosaic.version = 11 : i64} {
  func.func @_kv_accum_kernel(%arg0: i32, %arg1: i32, %arg2: memref<1x64x32xf32, #tpu.memory_space<vmem>>, %arg3: memref<32x64xf32, #tpu.memory_space<vmem>>, %arg4: memref<32x32xf32, #tpu.memory_space<vmem>>, %arg5: memref<1x32x64xf32, #tpu.memory_space<vmem>>, %arg6: memref<32x32xf32, #tpu.memory_space<vmem>>, %arg7: memref<32x1xf32, #tpu.memory_space<vmem>>) attributes {dimension_semantics = [#tpu.dimension_semantics<parallel>, #tpu.dimension_semantics<arbitrary>], iteration_bounds = array<i64: 4, 1>, scalar_prefetch = 0 : i64, scratch_operands = 2 : i64, tpu.core_type = #tpu.core_type<tc>, window_params = [{transform_indices = @transform_0, window_bounds = array<i64: 1, 64, 32>}, {pipeline_mode = #tpu.pipeline_mode<synchronous>, transform_indices = @transform_1, window_bounds = array<i64: 32, 64>}, {pipeline_mode = #tpu.pipeline_mode<synchronous>, transform_indices = @transform_2, window_bounds = array<i64: 32, 32>}, {transform_indices = @transform_3, window_bounds = array<i64: 1, 32, 64>}]} {
    %c0_i32 = arith.constant 0 : i32
    %0 = arith.cmpi eq, %arg1, %c0_i32 : i32
    %1 = arith.extui %0 : i1 to i32
    %c0_i32_0 = arith.constant 0 : i32
    %2 = arith.cmpi ne, %1, %c0_i32_0 : i32
    scf.if %2 {
      %cst_21 = arith.constant 0.000000e+00 : f32
      %29 = vector.broadcast %cst_21 : f32 to vector<32x32xf32>
      %c0_22 = arith.constant 0 : index
      %c0_23 = arith.constant 0 : index
      %30 = vector.load %arg6[%c0_22, %c0_23] : memref<32x32xf32, #tpu.memory_space<vmem>>, vector<32x32xf32>
      tpu.vector_store %arg6[%c0_22, %c0_23], %29 {strides = array<i32>} : memref<32x32xf32, #tpu.memory_space<vmem>>, vector<32x32xf32>,
      %cst_24 = arith.constant 0.000000e+00 : f32
      %31 = vector.broadcast %cst_24 : f32 to vector<32x1xf32>
      %c0_25 = arith.constant 0 : index
      %c0_26 = arith.constant 0 : index
      %32 = vector.load %arg7[%c0_25, %c0_26] : memref<32x1xf32, #tpu.memory_space<vmem>>, vector<32x1xf32>
      tpu.vector_store %arg7[%c0_25, %c0_26], %31 {strides = array<i32>} : memref<32x1xf32, #tpu.memory_space<vmem>>, vector<32x1xf32>,
    } else {
    }
    %c0 = arith.constant 0 : index
    %c0_1 = arith.constant 0 : index
    %c0_2 = arith.constant 0 : index
    %3 = vector.load %arg2[%c0, %c0_1, %c0_2] : memref<1x64x32xf32, #tpu.memory_space<vmem>>, vector<1x64x32xf32>
    %4 = vector.shape_cast %3 : vector<1x64x32xf32> to vector<64x32xf32>
    %c0_3 = arith.constant 0 : index
    %c0_4 = arith.constant 0 : index
    %5 = vector.load %arg3[%c0_3, %c0_4] : memref<32x64xf32, #tpu.memory_space<vmem>>, vector<32x64xf32>
    %cst = arith.constant dense<0.000000e+00> : vector<64x64xf32>
    %6 = tpu.matmul %4, %5, %cst {dimension_numbers = #tpu.dot_dimension_numbers<[1], [0], [0], [1], [0, 0, 1, 1], [], []>} : vector<64x32xf32>, vector<32x64xf32>, vector<64x64xf32> -> vector<64x64xf32>
    %7 = vector.extract_strided_slice %6 {offsets = [0, 0], sizes = [64, 32], strides = [1, 1]} : vector<64x64xf32> to vector<64x32xf32>
    %8 = vector.extract_strided_slice %6 {offsets = [0, 32], sizes = [64, 32], strides = [1, 1]} : vector<64x64xf32> to vector<64x32xf32>
    %cst_5 = arith.constant 0.000000e+00 : f32
    %9 = vector.broadcast %cst_5 : f32 to vector<64x32xf32>
    %10 = arith.cmpf ogt, %7, %9 : vector<64x32xf32>
    %cst_6 = arith.constant 1.000000e+00 : f32
    %11 = vector.broadcast %cst_6 : f32 to vector<64x32xf32>
    %12 = arith.addf %7, %11 : vector<64x32xf32>
    %cst_7 = arith.constant 0.000000e+00 : f32
    %13 = vector.broadcast %cst_7 : f32 to vector<64x32xf32>
    %14 = arith.minimumf %7, %13 : vector<64x32xf32>
    %15 = math.exp %14 : vector<64x32xf32>
    %16 = arith.select %10, %12, %15 : vector<64x32xi1>, vector<64x32xf32>
    %c0_8 = arith.constant 0 : index
    %c0_9 = arith.constant 0 : index
    %17 = vector.load %arg6[%c0_8, %c0_9] : memref<32x32xf32, #tpu.memory_space<vmem>>, vector<32x32xf32>
    %cst_10 = arith.constant dense<0.000000e+00> : vector<32x32xf32>
    %18 = tpu.matmul %16, %8, %cst_10 {dimension_numbers = #tpu.dot_dimension_numbers<[0], [0], [1], [1], [0, 1, 1, 1], [], []>} : vector<64x32xf32>, vector<64x32xf32>, vector<32x32xf32> -> vector<32x32xf32>
    %19 = arith.addf %17, %18 : vector<32x32xf32>
    %c0_11 = arith.constant 0 : index
    %c0_12 = arith.constant 0 : index
    %20 = vector.load %arg6[%c0_11, %c0_12] : memref<32x32xf32, #tpu.memory_space<vmem>>, vector<32x32xf32>
    tpu.vector_store %arg6[%c0_11, %c0_12], %19 {strides = array<i32>} : memref<32x32xf32, #tpu.memory_space<vmem>>, vector<32x32xf32>,
    %cst_13 = arith.constant 1.000000e+00 : f32
    %21 = vector.broadcast %cst_13 : f32 to vector<64x1xf32>
    %c0_14 = arith.constant 0 : index
    %c0_15 = arith.constant 0 : index
    %22 = vector.load %arg7[%c0_14, %c0_15] : memref<32x1xf32, #tpu.memory_space<vmem>>, vector<32x1xf32>
    %cst_16 = arith.constant dense<0.000000e+00> : vector<32x1xf32>
    %23 = tpu.matmul %16, %21, %cst_16 {dimension_numbers = #tpu.dot_dimension_numbers<[0], [0], [1], [1], [0, 1, 1, 1], [], []>} : vector<64x32xf32>, vector<64x1xf32>, vector<32x1xf32> -> vector<32x1xf32>
    %24 = arith.addf %22, %23 : vector<32x1xf32>
    %c0_17 = arith.constant 0 : index
    %c0_18 = arith.constant 0 : index
    %25 = vector.load %arg7[%c0_17, %c0_18] : memref<32x1xf32, #tpu.memory_space<vmem>>, vector<32x1xf32>
    tpu.vector_store %arg7[%c0_17, %c0_18], %24 {strides = array<i32>} : memref<32x1xf32, #tpu.memory_space<vmem>>, vector<32x1xf32>,
    %c0_i32_19 = arith.constant 0 : i32
    %26 = arith.cmpi eq, %arg1, %c0_i32_19 : i32
    %27 = arith.extui %26 : i1 to i32
    %c0_i32_20 = arith.constant 0 : i32
    %28 = arith.cmpi ne, %27, %c0_i32_20 : i32
    scf.if %28 {
      %c0_21 = arith.constant 0 : index
      %c0_22 = arith.constant 0 : index
      %29 = vector.load %arg4[%c0_21, %c0_22] : memref<32x32xf32, #tpu.memory_space<vmem>>, vector<32x32xf32>
      %c0_23 = arith.constant 0 : index
      %c0_24 = arith.constant 0 : index
      %30 = vector.load %arg6[%c0_23, %c0_24] : memref<32x32xf32, #tpu.memory_space<vmem>>, vector<32x32xf32>
      %31 = arith.mulf %30, %29 : vector<32x32xf32>
      %cst_25 = arith.constant 1.562500e-02 : f32
      %32 = vector.broadcast %cst_25 : f32 to vector<32x32xf32>
      %33 = arith.mulf %31, %32 : vector<32x32xf32>
      %c0_26 = arith.constant 0 : index
      %c0_27 = arith.constant 0 : index
      %c0_28 = arith.constant 0 : index
      %34 = vector.load %arg5[%c0_26, %c0_27, %c0_28] : memref<1x32x64xf32, #tpu.memory_space<vmem>>, vector<1x32x32xf32>
      %35 = vector.shape_cast %34 : vector<1x32x32xf32> to vector<32x32xf32>
      %36 = vector.shape_cast %33 : vector<32x32xf32> to vector<1x32x32xf32>
      tpu.vector_store %arg5[%c0_26, %c0_27, %c0_28], %36 {strides = array<i32>} : memref<1x32x64xf32, #tpu.memory_space<vmem>>, vector<1x32x32xf32>,
      %c0_29 = arith.constant 0 : index
      %c0_30 = arith.constant 0 : index
      %37 = vector.load %arg7[%c0_29, %c0_30] : memref<32x1xf32, #tpu.memory_space<vmem>>, vector<32x1xf32>
      %38 = vector.broadcast %37 : vector<32x1xf32> to vector<32x32xf32>
      %39 = arith.mulf %38, %29 : vector<32x32xf32>
      %cst_31 = arith.constant 1.562500e-02 : f32
      %40 = vector.broadcast %cst_31 : f32 to vector<32x32xf32>
      %41 = arith.mulf %39, %40 : vector<32x32xf32>
      %c0_32 = arith.constant 0 : index
      %c0_33 = arith.constant 0 : index
      %c32 = arith.constant 32 : index
      %42 = vector.load %arg5[%c0_32, %c0_33, %c32] : memref<1x32x64xf32, #tpu.memory_space<vmem>>, vector<1x32x32xf32>
      %43 = vector.shape_cast %42 : vector<1x32x32xf32> to vector<32x32xf32>
      %44 = vector.shape_cast %41 : vector<32x32xf32> to vector<1x32x32xf32>
      tpu.vector_store %arg5[%c0_32, %c0_33, %c32], %44 {strides = array<i32>} : memref<1x32x64xf32, #tpu.memory_space<vmem>>, vector<1x32x32xf32>,
    } else {
    }
    return
  }
  func.func @transform_0(%arg0: i32, %arg1: i32) -> (i32, i32, i32) {
    %c2_i32 = arith.constant 2 : i32
    %0 = arith.addi %arg0, %c2_i32 : i32
    %c4_i32 = arith.constant 4 : i32
    %c0_i32 = arith.constant 0 : i32
    %1 = arith.cmpi eq, %c4_i32, %c0_i32 : i32
    %c1_i32 = arith.constant 1 : i32
    %2 = arith.select %1, %c1_i32, %c4_i32 : i32
    %3 = arith.remsi %0, %2 : i32
    %c0_i32_0 = arith.constant 0 : i32
    %4 = arith.cmpi ne, %3, %c0_i32_0 : i32
    %c0_i32_1 = arith.constant 0 : i32
    %5 = arith.cmpi slt, %3, %c0_i32_1 : i32
    %c0_i32_2 = arith.constant 0 : i32
    %6 = arith.cmpi slt, %2, %c0_i32_2 : i32
    %7 = arith.xori %5, %6 : i1
    %8 = arith.andi %7, %4 : i1
    %9 = arith.addi %3, %2 : i32
    %10 = arith.select %8, %9, %3 : i32
    %c0_i32_3 = arith.constant 0 : i32
    %c0_i32_4 = arith.constant 0 : i32
    return %10, %arg1, %c0_i32_3 : i32, i32, i32
  }
  func.func @transform_1(%arg0: i32, %arg1: i32) -> (i32, i32) {
    %c0_i32 = arith.constant 0 : i32
    %c0_i32_0 = arith.constant 0 : i32
    %c0_i32_1 = arith.constant 0 : i32
    return %c0_i32, %c0_i32_0 : i32, i32
  }
  func.func @transform_2(%arg0: i32, %arg1: i32) -> (i32, i32) {
    %c0_i32 = arith.constant 0 : i32
    %c0_i32_0 = arith.constant 0 : i32
    %c0_i32_1 = arith.constant 0 : i32
    return %c0_i32, %c0_i32_0 : i32, i32
  }
  func.func @transform_3(%arg0: i32, %arg1: i32) -> (i32, i32, i32) {
    %c0_i32 = arith.constant 0 : i32
    %c0_i32_0 = arith.constant 0 : i32
    %c0_i32_1 = arith.constant 0 : i32
    return %arg0, %c0_i32, %c0_i32_0 : i32, i32, i32
  }
}

module attributes {stable_mosaic.version = 11 : i64} {
  func.func @_kv_accum_kernel(%arg0: i32, %arg1: i32, %arg2: memref<1x64x32xf32, #tpu.memory_space<vmem>>, %arg3: memref<32x64xf32, #tpu.memory_space<vmem>>, %arg4: memref<32x32xf32, #tpu.memory_space<vmem>>, %arg5: memref<1x32x64xf32, #tpu.memory_space<vmem>>, %arg6: memref<32x32xf32, #tpu.memory_space<vmem>>, %arg7: memref<32x1xf32, #tpu.memory_space<vmem>>) attributes {dimension_semantics = [#tpu.dimension_semantics<parallel>, #tpu.dimension_semantics<arbitrary>], iteration_bounds = array<i64: 4, 1>, scalar_prefetch = 0 : i64, scratch_operands = 2 : i64, tpu.core_type = #tpu.core_type<tc>, window_params = [{transform_indices = @transform_0, window_bounds = array<i64: 1, 64, 32>}, {pipeline_mode = #tpu.pipeline_mode<synchronous>, transform_indices = @transform_1, window_bounds = array<i64: 32, 64>}, {pipeline_mode = #tpu.pipeline_mode<synchronous>, transform_indices = @transform_2, window_bounds = array<i64: 32, 32>}, {transform_indices = @transform_3, window_bounds = array<i64: 1, 32, 64>}]} {
    %c0_i32 = arith.constant 0 : i32
    %0 = arith.cmpi eq, %arg1, %c0_i32 : i32
    %1 = arith.extui %0 : i1 to i32
    %c0_i32_0 = arith.constant 0 : i32
    %2 = arith.cmpi ne, %1, %c0_i32_0 : i32
    scf.if %2 {
      %cst_21 = arith.constant 0.000000e+00 : f32
      %29 = vector.broadcast %cst_21 : f32 to vector<32x32xf32>
      %c0_22 = arith.constant 0 : index
      %c0_23 = arith.constant 0 : index
      %30 = vector.load %arg6[%c0_22, %c0_23] : memref<32x32xf32, #tpu.memory_space<vmem>>, vector<32x32xf32>
      tpu.vector_store %arg6[%c0_22, %c0_23], %29 {strides = array<i32>} : memref<32x32xf32, #tpu.memory_space<vmem>>, vector<32x32xf32>,
      %cst_24 = arith.constant 0.000000e+00 : f32
      %31 = vector.broadcast %cst_24 : f32 to vector<32x1xf32>
      %c0_25 = arith.constant 0 : index
      %c0_26 = arith.constant 0 : index
      %32 = vector.load %arg7[%c0_25, %c0_26] : memref<32x1xf32, #tpu.memory_space<vmem>>, vector<32x1xf32>
      tpu.vector_store %arg7[%c0_25, %c0_26], %31 {strides = array<i32>} : memref<32x1xf32, #tpu.memory_space<vmem>>, vector<32x1xf32>,
    } else {
    }
    %c0 = arith.constant 0 : index
    %c0_1 = arith.constant 0 : index
    %c0_2 = arith.constant 0 : index
    %3 = vector.load %arg2[%c0, %c0_1, %c0_2] : memref<1x64x32xf32, #tpu.memory_space<vmem>>, vector<1x64x32xf32>
    %4 = vector.shape_cast %3 : vector<1x64x32xf32> to vector<64x32xf32>
    %c0_3 = arith.constant 0 : index
    %c0_4 = arith.constant 0 : index
    %5 = vector.load %arg3[%c0_3, %c0_4] : memref<32x64xf32, #tpu.memory_space<vmem>>, vector<32x64xf32>
    %cst = arith.constant dense<0.000000e+00> : vector<64x64xf32>
    %6 = tpu.matmul %4, %5, %cst {dimension_numbers = #tpu.dot_dimension_numbers<[1], [0], [0], [1], [0, 0, 1, 1], [], []>} : vector<64x32xf32>, vector<32x64xf32>, vector<64x64xf32> -> vector<64x64xf32>
    %7 = vector.extract_strided_slice %6 {offsets = [0, 0], sizes = [64, 32], strides = [1, 1]} : vector<64x64xf32> to vector<64x32xf32>
    %8 = vector.extract_strided_slice %6 {offsets = [0, 32], sizes = [64, 32], strides = [1, 1]} : vector<64x64xf32> to vector<64x32xf32>
    %cst_5 = arith.constant 0.000000e+00 : f32
    %9 = vector.broadcast %cst_5 : f32 to vector<64x32xf32>
    %10 = arith.cmpf ogt, %7, %9 : vector<64x32xf32>
    %cst_6 = arith.constant 1.000000e+00 : f32
    %11 = vector.broadcast %cst_6 : f32 to vector<64x32xf32>
    %12 = arith.addf %7, %11 : vector<64x32xf32>
    %cst_7 = arith.constant 0.000000e+00 : f32
    %13 = vector.broadcast %cst_7 : f32 to vector<64x32xf32>
    %14 = arith.minimumf %7, %13 : vector<64x32xf32>
    %15 = math.exp %14 : vector<64x32xf32>
    %16 = arith.select %10, %12, %15 : vector<64x32xi1>, vector<64x32xf32>
    %c0_8 = arith.constant 0 : index
    %c0_9 = arith.constant 0 : index
    %17 = vector.load %arg6[%c0_8, %c0_9] : memref<32x32xf32, #tpu.memory_space<vmem>>, vector<32x32xf32>
    %cst_10 = arith.constant dense<0.000000e+00> : vector<32x32xf32>
    %18 = tpu.matmul %16, %8, %cst_10 {dimension_numbers = #tpu.dot_dimension_numbers<[0], [0], [1], [1], [0, 1, 1, 1], [], []>} : vector<64x32xf32>, vector<64x32xf32>, vector<32x32xf32> -> vector<32x32xf32>
    %19 = arith.addf %17, %18 : vector<32x32xf32>
    %c0_11 = arith.constant 0 : index
    %c0_12 = arith.constant 0 : index
    %20 = vector.load %arg6[%c0_11, %c0_12] : memref<32x32xf32, #tpu.memory_space<vmem>>, vector<32x32xf32>
    tpu.vector_store %arg6[%c0_11, %c0_12], %19 {strides = array<i32>} : memref<32x32xf32, #tpu.memory_space<vmem>>, vector<32x32xf32>,
    %cst_13 = arith.constant 1.000000e+00 : f32
    %21 = vector.broadcast %cst_13 : f32 to vector<64x1xf32>
    %c0_14 = arith.constant 0 : index
    %c0_15 = arith.constant 0 : index
    %22 = vector.load %arg7[%c0_14, %c0_15] : memref<32x1xf32, #tpu.memory_space<vmem>>, vector<32x1xf32>
    %cst_16 = arith.constant dense<0.000000e+00> : vector<32x1xf32>
    %23 = tpu.matmul %16, %21, %cst_16 {dimension_numbers = #tpu.dot_dimension_numbers<[0], [0], [1], [1], [0, 1, 1, 1], [], []>} : vector<64x32xf32>, vector<64x1xf32>, vector<32x1xf32> -> vector<32x1xf32>
    %24 = arith.addf %22, %23 : vector<32x1xf32>
    %c0_17 = arith.constant 0 : index
    %c0_18 = arith.constant 0 : index
    %25 = vector.load %arg7[%c0_17, %c0_18] : memref<32x1xf32, #tpu.memory_space<vmem>>, vector<32x1xf32>
    tpu.vector_store %arg7[%c0_17, %c0_18], %24 {strides = array<i32>} : memref<32x1xf32, #tpu.memory_space<vmem>>, vector<32x1xf32>,
    %c0_i32_19 = arith.constant 0 : i32
    %26 = arith.cmpi eq, %arg1, %c0_i32_19 : i32
    %27 = arith.extui %26 : i1 to i32
    %c0_i32_20 = arith.constant 0 : i32
    %28 = arith.cmpi ne, %27, %c0_i32_20 : i32
    scf.if %28 {
      %c0_21 = arith.constant 0 : index
      %c0_22 = arith.constant 0 : index
      %29 = vector.load %arg4[%c0_21, %c0_22] : memref<32x32xf32, #tpu.memory_space<vmem>>, vector<32x32xf32>
      %c0_23 = arith.constant 0 : index
      %c0_24 = arith.constant 0 : index
      %30 = vector.load %arg6[%c0_23, %c0_24] : memref<32x32xf32, #tpu.memory_space<vmem>>, vector<32x32xf32>
      %31 = arith.mulf %30, %29 : vector<32x32xf32>
      %cst_25 = arith.constant 1.562500e-02 : f32
      %32 = vector.broadcast %cst_25 : f32 to vector<32x32xf32>
      %33 = arith.mulf %31, %32 : vector<32x32xf32>
      %c0_26 = arith.constant 0 : index
      %c0_27 = arith.constant 0 : index
      %c0_28 = arith.constant 0 : index
      %34 = vector.load %arg5[%c0_26, %c0_27, %c0_28] : memref<1x32x64xf32, #tpu.memory_space<vmem>>, vector<1x32x32xf32>
      %35 = vector.shape_cast %34 : vector<1x32x32xf32> to vector<32x32xf32>
      %36 = vector.shape_cast %33 : vector<32x32xf32> to vector<1x32x32xf32>
      tpu.vector_store %arg5[%c0_26, %c0_27, %c0_28], %36 {strides = array<i32>} : memref<1x32x64xf32, #tpu.memory_space<vmem>>, vector<1x32x32xf32>,
      %c0_29 = arith.constant 0 : index
      %c0_30 = arith.constant 0 : index
      %37 = vector.load %arg7[%c0_29, %c0_30] : memref<32x1xf32, #tpu.memory_space<vmem>>, vector<32x1xf32>
      %38 = vector.broadcast %37 : vector<32x1xf32> to vector<32x32xf32>
      %39 = arith.mulf %38, %29 : vector<32x32xf32>
      %cst_31 = arith.constant 1.562500e-02 : f32
      %40 = vector.broadcast %cst_31 : f32 to vector<32x32xf32>
      %41 = arith.mulf %39, %40 : vector<32x32xf32>
      %c0_32 = arith.constant 0 : index
      %c0_33 = arith.constant 0 : index
      %c32 = arith.constant 32 : index
      %42 = vector.load %arg5[%c0_32, %c0_33, %c32] : memref<1x32x64xf32, #tpu.memory_space<vmem>>, vector<1x32x32xf32>
      %43 = vector.shape_cast %42 : vector<1x32x32xf32> to vector<32x32xf32>
      %44 = vector.shape_cast %41 : vector<32x32xf32> to vector<1x32x32xf32>
      tpu.vector_store %arg5[%c0_32, %c0_33, %c32], %44 {strides = array<i32>} : memref<1x32x64xf32, #tpu.memory_space<vmem>>, vector<1x32x32xf32>,
    } else {
    }
    return
  }
  func.func @transform_0(%arg0: i32, %arg1: i32) -> (i32, i32, i32) {
    %c0_i32 = arith.constant 0 : i32
    %c0_i32_0 = arith.constant 0 : i32
    return %arg0, %arg1, %c0_i32 : i32, i32, i32
  }
  func.func @transform_1(%arg0: i32, %arg1: i32) -> (i32, i32) {
    %c0_i32 = arith.constant 0 : i32
    %c0_i32_0 = arith.constant 0 : i32
    %c0_i32_1 = arith.constant 0 : i32
    return %c0_i32, %c0_i32_0 : i32, i32
  }
  func.func @transform_2(%arg0: i32, %arg1: i32) -> (i32, i32) {
    %c0_i32 = arith.constant 0 : i32
    %c0_i32_0 = arith.constant 0 : i32
    %c0_i32_1 = arith.constant 0 : i32
    return %c0_i32, %c0_i32_0 : i32, i32
  }
  func.func @transform_3(%arg0: i32, %arg1: i32) -> (i32, i32, i32) {
    %c0_i32 = arith.constant 0 : i32
    %c0_i32_0 = arith.constant 0 : i32
    %c0_i32_1 = arith.constant 0 : i32
    return %arg0, %c0_i32, %c0_i32_0 : i32, i32, i32
  }
}

module attributes {stable_mosaic.version = 11 : i64} {
  func.func @_attn_mlp_kernel(%arg0: i32, %arg1: i32, %arg2: memref<1x64x32xf32, #tpu.memory_space<vmem>>, %arg3: memref<1x32x64xf32, #tpu.memory_space<vmem>>, %arg4: memref<32x32xf32, #tpu.memory_space<vmem>>, %arg5: memref<32x32xf32, #tpu.memory_space<vmem>>, %arg6: memref<32x64xf32, #tpu.memory_space<vmem>>, %arg7: memref<32x64xf32, #tpu.memory_space<vmem>>, %arg8: memref<64x32xf32, #tpu.memory_space<vmem>>, %arg9: memref<1x32xf32, #tpu.memory_space<vmem>>, %arg10: memref<1x32xf32, #tpu.memory_space<vmem>>, %arg11: memref<1x32xf32, #tpu.memory_space<vmem>>, %arg12: memref<1x32xf32, #tpu.memory_space<vmem>>, %arg13: memref<1x64x32xf32, #tpu.memory_space<vmem>>) attributes {dimension_semantics = [#tpu.dimension_semantics<parallel>, #tpu.dimension_semantics<parallel>], iteration_bounds = array<i64: 4, 1>, scalar_prefetch = 0 : i64, scratch_operands = 0 : i64, tpu.core_type = #tpu.core_type<tc>, window_params = [{transform_indices = @transform_0, window_bounds = array<i64: 1, 64, 32>}, {transform_indices = @transform_1, window_bounds = array<i64: 1, 32, 64>}, {pipeline_mode = #tpu.pipeline_mode<synchronous>, transform_indices = @transform_2, window_bounds = array<i64: 32, 32>}, {pipeline_mode = #tpu.pipeline_mode<synchronous>, transform_indices = @transform_3, window_bounds = array<i64: 32, 32>}, {pipeline_mode = #tpu.pipeline_mode<synchronous>, transform_indices = @transform_4, window_bounds = array<i64: 32, 64>}, {pipeline_mode = #tpu.pipeline_mode<synchronous>, transform_indices = @transform_5, window_bounds = array<i64: 32, 64>}, {pipeline_mode = #tpu.pipeline_mode<synchronous>, transform_indices = @transform_6, window_bounds = array<i64: 64, 32>}, {pipeline_mode = #tpu.pipeline_mode<synchronous>, transform_indices = @transform_7, window_bounds = array<i64: 1, 32>}, {pipeline_mode = #tpu.pipeline_mode<synchronous>, transform_indices = @transform_8, window_bounds = array<i64: 1, 32>}, {pipeline_mode = #tpu.pipeline_mode<synchronous>, transform_indices = @transform_9, window_bounds = array<i64: 1, 32>}, {pipeline_mode = #tpu.pipeline_mode<synchronous>, transform_indices = @transform_10, window_bounds = array<i64: 1, 32>}, {transform_indices = @transform_11, window_bounds = array<i64: 1, 64, 32>}]} {
    %c0 = arith.constant 0 : index
    %c0_0 = arith.constant 0 : index
    %c0_1 = arith.constant 0 : index
    %0 = vector.load %arg2[%c0, %c0_0, %c0_1] : memref<1x64x32xf32, #tpu.memory_space<vmem>>, vector<1x64x32xf32>
    %1 = vector.shape_cast %0 : vector<1x64x32xf32> to vector<64x32xf32>
    %c0_2 = arith.constant 0 : index
    %c0_3 = arith.constant 0 : index
    %2 = vector.load %arg4[%c0_2, %c0_3] : memref<32x32xf32, #tpu.memory_space<vmem>>, vector<32x32xf32>
    %cst = arith.constant dense<0.000000e+00> : vector<64x32xf32>
    %3 = tpu.matmul %1, %2, %cst {dimension_numbers = #tpu.dot_dimension_numbers<[1], [0], [0], [1], [0, 0, 1, 1], [], []>} : vector<64x32xf32>, vector<32x32xf32>, vector<64x32xf32> -> vector<64x32xf32>
    %cst_4 = arith.constant 0.000000e+00 : f32
    %4 = vector.broadcast %cst_4 : f32 to vector<64x32xf32>
    %5 = arith.cmpf ogt, %3, %4 : vector<64x32xf32>
    %cst_5 = arith.constant 1.000000e+00 : f32
    %6 = vector.broadcast %cst_5 : f32 to vector<64x32xf32>
    %7 = arith.addf %3, %6 : vector<64x32xf32>
    %cst_6 = arith.constant 0.000000e+00 : f32
    %8 = vector.broadcast %cst_6 : f32 to vector<64x32xf32>
    %9 = arith.minimumf %3, %8 : vector<64x32xf32>
    %10 = math.exp %9 : vector<64x32xf32>
    %11 = arith.select %5, %7, %10 : vector<64x32xi1>, vector<64x32xf32>
    %c0_7 = arith.constant 0 : index
    %c0_8 = arith.constant 0 : index
    %c0_9 = arith.constant 0 : index
    %12 = vector.load %arg3[%c0_7, %c0_8, %c0_9] : memref<1x32x64xf32, #tpu.memory_space<vmem>>, vector<1x32x64xf32>
    %13 = vector.shape_cast %12 : vector<1x32x64xf32> to vector<32x64xf32>
    %cst_10 = arith.constant dense<0.000000e+00> : vector<64x64xf32>
    %14 = tpu.matmul %11, %13, %cst_10 {dimension_numbers = #tpu.dot_dimension_numbers<[1], [0], [0], [1], [0, 0, 1, 1], [], []>} : vector<64x32xf32>, vector<32x64xf32>, vector<64x64xf32> -> vector<64x64xf32>
    %15 = vector.extract_strided_slice %14 {offsets = [0, 0], sizes = [64, 32], strides = [1, 1]} : vector<64x64xf32> to vector<64x32xf32>
    %16 = vector.extract_strided_slice %14 {offsets = [0, 32], sizes = [64, 32], strides = [1, 1]} : vector<64x64xf32> to vector<64x32xf32>
    %cst_11 = arith.constant 1.562500e-08 : f32
    %17 = vector.broadcast %cst_11 : f32 to vector<64x32xf32>
    %18 = arith.addf %16, %17 : vector<64x32xf32>
    %cst_12 = arith.constant 1.000000e+00 : f32
    %19 = vector.broadcast %cst_12 : f32 to vector<64x32xf32>
    %20 = arith.divf %19, %18 : vector<64x32xf32>
    %21 = arith.mulf %15, %20 : vector<64x32xf32>
    %c0_13 = arith.constant 0 : index
    %c0_14 = arith.constant 0 : index
    %22 = vector.load %arg5[%c0_13, %c0_14] : memref<32x32xf32, #tpu.memory_space<vmem>>, vector<32x32xf32>
    %cst_15 = arith.constant dense<0.000000e+00> : vector<64x32xf32>
    %23 = tpu.matmul %21, %22, %cst_15 {dimension_numbers = #tpu.dot_dimension_numbers<[1], [0], [0], [1], [0, 0, 1, 1], [], []>} : vector<64x32xf32>, vector<32x32xf32>, vector<64x32xf32> -> vector<64x32xf32>
    %c0_16 = arith.constant 0 : index
    %c0_17 = arith.constant 0 : index
    %24 = vector.load %arg9[%c0_16, %c0_17] : memref<1x32xf32, #tpu.memory_space<vmem>>, vector<1x32xf32>
    %c0_18 = arith.constant 0 : index
    %c0_19 = arith.constant 0 : index
    %25 = vector.load %arg10[%c0_18, %c0_19] : memref<1x32xf32, #tpu.memory_space<vmem>>, vector<1x32xf32>
    %cst_20 = arith.constant dense<0.000000e+00> : vector<64xf32>
    %26 = vector.multi_reduction <add>, %23, %cst_20 [1] : vector<64x32xf32> to vector<64xf32>
    %27 = vector.shape_cast %26 : vector<64xf32> to vector<64x1xf32>
    %cst_21 = arith.constant 3.200000e+01 : f32
    %28 = vector.broadcast %cst_21 : f32 to vector<64x1xf32>
    %29 = arith.divf %27, %28 : vector<64x1xf32>
    %30 = vector.broadcast %29 : vector<64x1xf32> to vector<64x32xf32>
    %31 = arith.subf %23, %30 : vector<64x32xf32>
    %32 = arith.mulf %31, %31 : vector<64x32xf32>
    %cst_22 = arith.constant dense<0.000000e+00> : vector<64xf32>
    %33 = vector.multi_reduction <add>, %32, %cst_22 [1] : vector<64x32xf32> to vector<64xf32>
    %34 = vector.shape_cast %33 : vector<64xf32> to vector<64x1xf32>
    %cst_23 = arith.constant 3.200000e+01 : f32
    %35 = vector.broadcast %cst_23 : f32 to vector<64x1xf32>
    %36 = arith.divf %34, %35 : vector<64x1xf32>
    %cst_24 = arith.constant 9.99999974E-6 : f32
    %37 = vector.broadcast %cst_24 : f32 to vector<64x1xf32>
    %38 = arith.addf %36, %37 : vector<64x1xf32>
    %39 = math.rsqrt %38 : vector<64x1xf32>
    %40 = vector.broadcast %39 : vector<64x1xf32> to vector<64x32xf32>
    %41 = arith.mulf %31, %40 : vector<64x32xf32>
    %42 = vector.broadcast %24 : vector<1x32xf32> to vector<64x32xf32>
    %43 = arith.mulf %41, %42 : vector<64x32xf32>
    %44 = vector.broadcast %25 : vector<1x32xf32> to vector<64x32xf32>
    %45 = arith.addf %43, %44 : vector<64x32xf32>
    %c0_25 = arith.constant 0 : index
    %c0_26 = arith.constant 0 : index
    %46 = vector.load %arg6[%c0_25, %c0_26] : memref<32x64xf32, #tpu.memory_space<vmem>>, vector<32x64xf32>
    %cst_27 = arith.constant dense<0.000000e+00> : vector<64x64xf32>
    %47 = tpu.matmul %1, %46, %cst_27 {dimension_numbers = #tpu.dot_dimension_numbers<[1], [0], [0], [1], [0, 0, 1, 1], [], []>} : vector<64x32xf32>, vector<32x64xf32>, vector<64x64xf32> -> vector<64x64xf32>
    %c0_28 = arith.constant 0 : index
    %c0_29 = arith.constant 0 : index
    %48 = vector.load %arg7[%c0_28, %c0_29] : memref<32x64xf32, #tpu.memory_space<vmem>>, vector<32x64xf32>
    %cst_30 = arith.constant dense<0.000000e+00> : vector<64x64xf32>
    %49 = tpu.matmul %45, %48, %cst_30 {dimension_numbers = #tpu.dot_dimension_numbers<[1], [0], [0], [1], [0, 0, 1, 1], [], []>} : vector<64x32xf32>, vector<32x64xf32>, vector<64x64xf32> -> vector<64x64xf32>
    %50 = arith.addf %47, %49 : vector<64x64xf32>
    %cst_31 = arith.constant 0.000000e+00 : f32
    %51 = vector.broadcast %cst_31 : f32 to vector<64x64xf32>
    %52 = arith.maximumf %50, %51 : vector<64x64xf32>
    %c0_32 = arith.constant 0 : index
    %c0_33 = arith.constant 0 : index
    %53 = vector.load %arg8[%c0_32, %c0_33] : memref<64x32xf32, #tpu.memory_space<vmem>>, vector<64x32xf32>
    %cst_34 = arith.constant dense<0.000000e+00> : vector<64x32xf32>
    %54 = tpu.matmul %52, %53, %cst_34 {dimension_numbers = #tpu.dot_dimension_numbers<[1], [0], [0], [1], [0, 0, 1, 1], [], []>} : vector<64x64xf32>, vector<64x32xf32>, vector<64x32xf32> -> vector<64x32xf32>
    %c0_35 = arith.constant 0 : index
    %c0_36 = arith.constant 0 : index
    %55 = vector.load %arg11[%c0_35, %c0_36] : memref<1x32xf32, #tpu.memory_space<vmem>>, vector<1x32xf32>
    %c0_37 = arith.constant 0 : index
    %c0_38 = arith.constant 0 : index
    %56 = vector.load %arg12[%c0_37, %c0_38] : memref<1x32xf32, #tpu.memory_space<vmem>>, vector<1x32xf32>
    %cst_39 = arith.constant dense<0.000000e+00> : vector<64xf32>
    %57 = vector.multi_reduction <add>, %54, %cst_39 [1] : vector<64x32xf32> to vector<64xf32>
    %58 = vector.shape_cast %57 : vector<64xf32> to vector<64x1xf32>
    %cst_40 = arith.constant 3.200000e+01 : f32
    %59 = vector.broadcast %cst_40 : f32 to vector<64x1xf32>
    %60 = arith.divf %58, %59 : vector<64x1xf32>
    %61 = vector.broadcast %60 : vector<64x1xf32> to vector<64x32xf32>
    %62 = arith.subf %54, %61 : vector<64x32xf32>
    %63 = arith.mulf %62, %62 : vector<64x32xf32>
    %cst_41 = arith.constant dense<0.000000e+00> : vector<64xf32>
    %64 = vector.multi_reduction <add>, %63, %cst_41 [1] : vector<64x32xf32> to vector<64xf32>
    %65 = vector.shape_cast %64 : vector<64xf32> to vector<64x1xf32>
    %cst_42 = arith.constant 3.200000e+01 : f32
    %66 = vector.broadcast %cst_42 : f32 to vector<64x1xf32>
    %67 = arith.divf %65, %66 : vector<64x1xf32>
    %cst_43 = arith.constant 9.99999974E-6 : f32
    %68 = vector.broadcast %cst_43 : f32 to vector<64x1xf32>
    %69 = arith.addf %67, %68 : vector<64x1xf32>
    %70 = math.rsqrt %69 : vector<64x1xf32>
    %71 = vector.broadcast %70 : vector<64x1xf32> to vector<64x32xf32>
    %72 = arith.mulf %62, %71 : vector<64x32xf32>
    %73 = vector.broadcast %55 : vector<1x32xf32> to vector<64x32xf32>
    %74 = arith.mulf %72, %73 : vector<64x32xf32>
    %75 = vector.broadcast %56 : vector<1x32xf32> to vector<64x32xf32>
    %76 = arith.addf %74, %75 : vector<64x32xf32>
    %77 = arith.addf %1, %76 : vector<64x32xf32>
    %c0_44 = arith.constant 0 : index
    %c0_45 = arith.constant 0 : index
    %c0_46 = arith.constant 0 : index
    %78 = vector.load %arg13[%c0_44, %c0_45, %c0_46] : memref<1x64x32xf32, #tpu.memory_space<vmem>>, vector<1x64x32xf32>
    %79 = vector.shape_cast %78 : vector<1x64x32xf32> to vector<64x32xf32>
    %80 = vector.shape_cast %77 : vector<64x32xf32> to vector<1x64x32xf32>
    tpu.vector_store %arg13[%c0_44, %c0_45, %c0_46], %80 {strides = array<i32>} : memref<1x64x32xf32, #tpu.memory_space<vmem>>, vector<1x64x32xf32>,
    return
  }
  func.func @transform_0(%arg0: i32, %arg1: i32) -> (i32, i32, i32) {
    %c0_i32 = arith.constant 0 : i32
    %c0_i32_0 = arith.constant 0 : i32
    return %arg0, %arg1, %c0_i32 : i32, i32, i32
  }
  func.func @transform_1(%arg0: i32, %arg1: i32) -> (i32, i32, i32) {
    %c0_i32 = arith.constant 0 : i32
    %c0_i32_0 = arith.constant 0 : i32
    %c0_i32_1 = arith.constant 0 : i32
    return %arg0, %c0_i32, %c0_i32_0 : i32, i32, i32
  }
  func.func @transform_2(%arg0: i32, %arg1: i32) -> (i32, i32) {
    %c0_i32 = arith.constant 0 : i32
    %c0_i32_0 = arith.constant 0 : i32
    %c0_i32_1 = arith.constant 0 : i32
    return %c0_i32, %c0_i32_0 : i32, i32
  }
  func.func @transform_3(%arg0: i32, %arg1: i32) -> (i32, i32) {
    %c0_i32 = arith.constant 0 : i32
    %c0_i32_0 = arith.constant 0 : i32
    %c0_i32_1 = arith.constant 0 : i32
    return %c0_i32, %c0_i32_0 : i32, i32
  }
  func.func @transform_4(%arg0: i32, %arg1: i32) -> (i32, i32) {
    %c0_i32 = arith.constant 0 : i32
    %c0_i32_0 = arith.constant 0 : i32
    %c0_i32_1 = arith.constant 0 : i32
    return %c0_i32, %c0_i32_0 : i32, i32
  }
  func.func @transform_5(%arg0: i32, %arg1: i32) -> (i32, i32) {
    %c0_i32 = arith.constant 0 : i32
    %c0_i32_0 = arith.constant 0 : i32
    %c0_i32_1 = arith.constant 0 : i32
    return %c0_i32, %c0_i32_0 : i32, i32
  }
  func.func @transform_6(%arg0: i32, %arg1: i32) -> (i32, i32) {
    %c0_i32 = arith.constant 0 : i32
    %c0_i32_0 = arith.constant 0 : i32
    %c0_i32_1 = arith.constant 0 : i32
    return %c0_i32, %c0_i32_0 : i32, i32
  }
  func.func @transform_7(%arg0: i32, %arg1: i32) -> (i32, i32) {
    %c0_i32 = arith.constant 0 : i32
    %c0_i32_0 = arith.constant 0 : i32
    %c0_i32_1 = arith.constant 0 : i32
    return %c0_i32, %c0_i32_0 : i32, i32
  }
  func.func @transform_8(%arg0: i32, %arg1: i32) -> (i32, i32) {
    %c0_i32 = arith.constant 0 : i32
    %c0_i32_0 = arith.constant 0 : i32
    %c0_i32_1 = arith.constant 0 : i32
    return %c0_i32, %c0_i32_0 : i32, i32
  }
  func.func @transform_9(%arg0: i32, %arg1: i32) -> (i32, i32) {
    %c0_i32 = arith.constant 0 : i32
    %c0_i32_0 = arith.constant 0 : i32
    %c0_i32_1 = arith.constant 0 : i32
    return %c0_i32, %c0_i32_0 : i32, i32
  }
  func.func @transform_10(%arg0: i32, %arg1: i32) -> (i32, i32) {
    %c0_i32 = arith.constant 0 : i32
    %c0_i32_0 = arith.constant 0 : i32
    %c0_i32_1 = arith.constant 0 : i32
    return %c0_i32, %c0_i32_0 : i32, i32
  }
  func.func @transform_11(%arg0: i32, %arg1: i32) -> (i32, i32, i32) {
    %c0_i32 = arith.constant 0 : i32
    %c0_i32_0 = arith.constant 0 : i32
    return %arg0, %arg1, %c0_i32 : i32, i32, i32
  }
}

</mosaic_0001>

<bundles_post_ra>
// kernel: feature_attention.10
= control target key start
LH: loop header
LB: loop body
LE: loop exit
PB: predicated region body
PF: predicated region fallthrough
CT: control target
= control target key end

     0   :  { %s1145_s12 = smov 0   ;;  %s1147_s13 = smov 0   ;;  %s1311_s0 = inlined_call_operand.vmem [shape: f32[4,64,32], index: 0, kind: input, shape index: {}]   ;;  %s1312_s1 = inlined_call_operand.vmem [shape: f32[32,64], index: 1, kind: input, shape index: {}]   ;;  %s1313_s2 = inlined_call_operand.vmem [shape: f32[32,32], index: 2, kind: input, shape index: {}]   ;;  %s1314_s3 = inlined_call_operand.vmem [shape: f32[4,32,64], index: 3, kind: output, shape index: {}]  }
   0x1   :  { %s1149_s14 = smov 0  }
   0x2 LB: > { %s25_s15 = sadd.s32 1, %s1114_s13  ;;  %p921_p0 = scmp.ge.s32.totalorder %s1118_s14, 1  ;;  %s1118_s14 = sphi %s1149_s14, %s13_s14   ;;  %s1114_s13 = sphi %s1147_s13, %s1316_s13   ;;  %s1110_s12 = sphi %s1145_s12, %s1315_s12  }
   0x3   : > { %p27_p1 = scmp.ge.s32.totalorder %s25_s15, 4  ;;  %p208_p2 = scmp.lt.s32.totalorder %s1118_s14, 5 }
   0x5   : > { %s1318_s15 = smov (%p27_p1, %s25_s15), 0  ;;  %p209_p3 = pnand %p921_p0, %p208_p2 }
   0x6   : > { %s249_s20 = sadd.s32 (!%p209_p3), 2, %s1110_s12  ;;  %s1121_s7 = smov (!%p209_p3), 96  }
   0x7   : > { %212 = sbr.rel (%p209_p3) target bundleno = 827 (0x33b), region = 32  ;;  %p250_p4 = scmp.lt.s32.totalorder (!%p209_p3), %s249_s20, 0 }
   0x8   : > { %s251_s21 = ssub.s32 (!%p209_p3), 0, %s249_s20  ;;  %p285_p7 = scmp.lt.s32.totalorder (!%p209_p3), %s1110_s12, 3 }
   0x9   : > { %s922_s24 = smin.u32 (!%p209_p3), %s251_s21, %s249_s20  ;;  %s1124_s23 = smov (!%p209_p3), 32  }
   0xa   : > { %s253_s25 = sand.u32 (!%p209_p3), 3, %s922_s24  }
   0xb   : > { %s254_s28 = ssub.s32 (!%p209_p3), 0, %s253_s25 }
   0xc   : > { %v315_v0 = vld [vmem:[%s1312_s1 + $0x18] sm:$0xff]  ;;  %v314_v1 = vld [vmem:[%s1312_s1 + $0x10] sm:$0xff]  ;;  %v313_v2 = vld [vmem:[%s1312_s1 + $0x8] sm:$0xff]  ;;  %s1320_s28 = smov (!%p250_p4, %s254_s28), %s253_s25  ;;  %vm294_vm0 = vcmask 261120   ;;  %v1120_v21 = vmov 1.0   ;;  %vm299_vm5 = vcmask 7168  }
   0xd   : > { %985 = vmatprep.subr.mxu0 %v315_v0  ;;  %v312_v3 = vld [vmem:[%s1312_s1] sm:$0xff]  ;;  %p924_p5 = scmp.lt.s32.totalorder %s1320_s28, 0  ;;  %s260_s29 = sadd.s32 4, %s1320_s28  ;;  %v1122_v51 = vmov 0.0   ;;  %vm562_vm10 = vcmask 523264   ;;  %vm837_vm11 = vcmask 523520  }
   0xe   : > { %986 = vmatpush3.msra.mxu0 %v315_v0  ;;  %301 = vst.msk [vmem:[#allocation3 + $0x8] sm:$0xff] %vm299_vm5, %v1122_v51  ;;  %300 = vst.msk [vmem:[#allocation3] sm:$0xff] %vm299_vm5, %v1122_v51  ;;  %s1326_s12 = smov (!%p285_p7, %s1110_s12), 3 }
   0xf   : > { %987 = vmatprep.subr.mxu0 %v314_v1  ;;  %s1322_s29 = smov (!%p924_p5, %s260_s29), %s1320_s28  ;;  %295 = vst.msk [vmem:[#allocation2] sm:$0xff] %vm294_vm0, %v1122_v51  ;;  %296 = vst.msk [vmem:[#allocation2 + $0x8] sm:$0xff] %vm294_vm0, %v1122_v51  ;;  %s948_s10 = sshll.u32 %s1326_s12, 5 }
  0x10   : > { %988 = vmatpush3.msra.mxu0 %v314_v1  ;;  %p263_p6 = scmp.lt.s32.totalorder %s1322_s29, 3  ;;  %297 = vst.msk [vmem:[#allocation2 + $0x10] sm:$0xff] %vm294_vm0, %v1122_v51  ;;  %298 = vst.msk [vmem:[#allocation2 + $0x18] sm:$0xff] %vm294_vm0, %v1122_v51  ;;  %s1285_s21 = scalar_lea.vmem %s1314_s3, %s948_s10 }
  0x11   : > { %989 = vmatprep.subr.mxu0 %v313_v2  ;;  %302 = vst.msk [vmem:[#allocation3 + $0x10] sm:$0xff] %vm299_vm5, %v1122_v51  ;;  %303 = vst.msk [vmem:[#allocation3 + $0x18] sm:$0xff] %vm299_vm5, %v1122_v51 }
  0x12   : > { %990 = vmatpush3.msra.mxu0 %v313_v2  ;;  %s1324_s29 = smov (!%p263_p6, %s1322_s29), 3 }
  0x13   : > { %991 = vmatprep.subr.mxu0 %v312_v3  ;;  %s947_s30 = sshll.u32 %s1324_s29, 6 }
  0x14   : > { %992 = vmatpush3.msra.mxu0 %v312_v3  ;;  %s270_s6 = scalar_lea.vmem %s1311_s0, %s947_s30 }
  0x15   : > { %v304_v4 = vld [vmem:[%s270_s6] sm:$0xff]  ;;  %v305_v5 = vld [vmem:[%s270_s6 + $0x8] sm:$0xff]  ;;  %v306_v6 = vld [vmem:[%s270_s6 + $0x10] sm:$0xff]  ;;  %1027 = vmatprep.subr.mxu0 %v1120_v21 }
  0x16   : > { %993 = vmatprep.mubr.msk.f32.mxu0 %vm294_vm0, %v304_v4  ;;  %v307_v7 = vld [vmem:[%s270_s6 + $0x18] sm:$0xff]  ;;  %v308_v8 = vld [vmem:[%s270_s6 + $0x20] sm:$0xff]  ;;  %v309_v9 = vld [vmem:[%s270_s6 + $0x28] sm:$0xff] }
  0x17   : > { %994 = vmatmul.mubr.msk.f32.vlgmr.msra.gmra.mxu0 %vm294_vm0, %v305_v5  ;;  %v310_v10 = vld [vmem:[%s270_s6 + $0x30] sm:$0xff]  ;;  %v311_v11 = vld [vmem:[%s270_s6 + $0x38] sm:$0xff] }
  0x18   : > { %996 = vmatprep.mubr.msk.f32.mxu0 %vm294_vm0, %v306_v6  ;;  %1028 = vmatpush3.msra.mxu0 %v1120_v21 }
  0x19   : > { %1029 = vmatprep.subr.mxu0 %v1120_v21 }
  0x1a   : > { %1030 = vmatpush3.msra.mxu0 %v1120_v21 }
  0x1b   : > { %997 = vmatmul.mubr.msk.f32.gmra.mxu0 %vm294_vm0, %v307_v7  ;;  %1031 = vmatprep.subr.mxu0 %v1120_v21 }
  0x1c   : > { %999 = vmatprep.mubr.msk.f32.mxu0 %vm294_vm0, %v308_v8  ;;  %1032 = vmatpush3.msra.mxu0 %v1120_v21 }
  0x1d   : > { %1033 = vmatprep.subr.mxu0 %v1120_v21 }
  0x1e   : > { %1034 = vmatpush3.msra.mxu0 %v1120_v21 }
  0x1f   : > { %1000 = vmatmul.mubr.msk.f32.gmra.mxu0 %vm294_vm0, %v309_v9  ;;  %1035 = vmatprep.subr.mxu0 %v1120_v21 }
  0x20   : > { %1002 = vmatprep.mubr.msk.f32.mxu0 %vm294_vm0, %v310_v10  ;;  %1036 = vmatpush3.msra.mxu0 %v1120_v21  ;;  %v1123_v10 = vmov 0  }
  0x21   : > { %1037 = vmatprep.subr.mxu0 %v1120_v21  ;;  %1079 = vset.pattern.permute.xlu1 %v1123_v10 }
  0x22   : > { %1038 = vmatpush3.msra.mxu0 %v1120_v21 }
  0x23   : > { %1003 = vmatmul.mubr.msk.f32.gmra.mxu0 %vm294_vm0, %v311_v11  ;;  %1039 = vmatprep.subr.mxu0 %v1120_v21  ;;  %v669_v11 = vld [vmem:[#allocation3 + $0x8] sm:$0xff] }
  0x24   : > { %1040 = vmatpush3.msra.mxu0 %v1120_v21 }
  0x25   : > { %1041 = vmatprep.subr.mxu0 %v1120_v21 }
  0x26   : > { %1042 = vmatpush3.msra.mxu0 %v1120_v21 }
  0xd7   : > { %v1189_v12 = vpop.f32.mrf.mxu0 }
  0xd8   : > { %v463_v13 = vmin.f32 %v1189_v12, 0.0  ;;  %v455_v38 = vadd.f32 1.0, %v1189_v12  ;;  %vm447_vm2 = vcmp.gt.f32.partialorder %v1189_v12, 0.0 }
  0xd9   : > { %v1192_v14 = vpop.f32.mrf.mxu0 }
  0xda   : > { %v462_v15 = vmin.f32 %v1192_v14, 0.0  ;;  %v472_v17 = vmul.f32 1.442695, %v463_v13  ;;  %v454_v32 = vadd.f32 1.0, %v1192_v14  ;;  %vm446_vm1 = vcmp.gt.f32.partialorder %v1192_v14, 0.0  ;;  %v668_v13 = vld [vmem:[#allocation3] sm:$0xff] }
  0xdb   : > { %v1195_v16 = vpop.f32.mrf.mxu0 }
  0xdc   : > { %v470_v18 = vmul.f32 1.442695, %v462_v15  ;;  %v465_v23 = vmin.f32 %v1195_v16, 0.0  ;;  %v457_v47 = vadd.f32 1.0, %v1195_v16  ;;  %vm449_vm4 = vcmp.gt.f32.partialorder %v1195_v16, 0.0 }
  0xdd   : > { %v1197_v19 = vpop.f32.mrf.mxu0 }
  0xde   : > { %1080 = vpow2.f32 %v470_v18  ;;  %v464_v20 = vmin.f32 %v1197_v19, 0.0  ;;  %v476_v27 = vmul.f32 1.442695, %v465_v23  ;;  %v456_v43 = vadd.f32 1.0, %v1197_v19  ;;  %v671_v18 = vld [vmem:[#allocation3 + $0x18] sm:$0xff]  ;;  %v670_v23 = vld [vmem:[#allocation3 + $0x10] sm:$0xff] }
  0xdf   : > { %v1200_v22 = vpop.f32.mrf.mxu0  ;;  %1082 = vpow2.f32 %v472_v17  ;;  %vm448_vm3 = vcmp.gt.f32.partialorder %v1197_v19, 0.0  ;;  %v495_v17 = vld [vmem:[#allocation2 + $0x8] sm:$0xff] }
  0xe0   : > { %v474_v24 = vmul.f32 1.442695, %v464_v20  ;;  %v467_v30 = vmin.f32 %v1200_v22, 0.0  ;;  %v459_v54 = vadd.f32 1.0, %v1200_v22  ;;  %vm451_vm7 = vcmp.gt.f32.partialorder %v1200_v22, 0.0  ;;  %v494_v20 = vld [vmem:[#allocation2] sm:$0xff] }
  0xe1   : > { %v1203_v25 = vpop.f32.mrf.mxu0 }
  0xe2   : > { %1084 = vpow2.f32 %v474_v24  ;;  %v466_v28 = vmin.f32 %v1203_v25, 0.0  ;;  %v480_v34 = vmul.f32 1.442695, %v467_v30  ;;  %v458_v50 = vadd.f32 1.0, %v1203_v25 }
  0xe3   : > { %v1205_v26 = vpop.f32.mrf.mxu0  ;;  %1086 = vpow2.f32 %v476_v27  ;;  %vm450_vm6 = vcmp.gt.f32.partialorder %v1203_v25, 0.0 }
  0xe4   : > { %552 = vrot.lane.b32.xlu1 %v1205_v26, %s1121_s7  ;;  %v478_v31 = vmul.f32 1.442695, %v466_v28  ;;  %v469_v39 = vmin.f32 %v1205_v26, 0.0  ;;  %v461_v60 = vadd.f32 1.0, %v1205_v26  ;;  %vm453_vm9 = vcmp.gt.f32.partialorder %v1205_v26, 0.0  ;;  %v497_v26 = vld [vmem:[#allocation2 + $0x18] sm:$0xff] }
  0xe5   : > { %v1210_v29 = vpop.f32.mrf.mxu0 }
  0xe6   : > { %1088 = vpow2.f32 %v478_v31  ;;  %v468_v35 = vmin.f32 %v1210_v29, 0.0  ;;  %v484_v44 = vmul.f32 1.442695, %v469_v39  ;;  %v460_v57 = vadd.f32 1.0, %v1210_v29  ;;  %v769_v39 = vld [vmem:[%s1313_s2] sm:$0xff] }
  0xe7   : > { %1090 = vpow2.f32 %v480_v34  ;;  %vm452_vm8 = vcmp.gt.f32.partialorder %v1210_v29, 0.0 }
  0xe8   : > { %550 = vrot.lane.b32.xlu1 %v1210_v29, %s1121_s7  ;;  %v482_v40 = vmul.f32 1.442695, %v468_v35 }
  0xea   : > { %1092 = vpow2.f32 %v482_v40 }
  0xeb   : > { %v1081_v33 = vpop.eup %1080  ;;  %1094 = vpow2.f32 %v484_v44 }
  0xec   : > { %548 = vrot.lane.b32.xlu1 %v1200_v22, %s1121_s7  ;;  %v486_v36 = vsel %vm446_vm1, %v454_v32, %v1081_v33  ;;  %v1083_v37 = vpop.eup %1082  ;;  %v496_v32 = vld [vmem:[#allocation2 + $0x10] sm:$0xff] }
  0xed   : > { %498 = vxpose.xlu0.b32.start [1/8] (short) (narrow) %v486_v36, 32  ;;  %v487_v41 = vsel %vm447_vm2, %v455_v38, %v1083_v37  ;;  %v770_v37 = vld [vmem:[%s1313_s2 + $0x8] sm:$0xff] }
  0xef   : > { %v1085_v42 = vpop.eup %1084 }
  0xf0   : > { %546 = vrot.lane.b32.xlu1 %v1203_v25, %s1121_s7  ;;  %v488_v45 = vsel %vm448_vm3, %v456_v43, %v1085_v42  ;;  %v1087_v46 = vpop.eup %1086  ;;  %v772_v42 = vld [vmem:[%s1313_s2 + $0x18] sm:$0xff] }
  0xf1   : > { %499 = vxpose.xlu0.b32.cont [2/8] (short) (narrow) %v487_v41, 32  ;;  %v489_v48 = vsel %vm449_vm4, %v457_v47, %v1087_v46  ;;  %v771_v46 = vld [vmem:[%s1313_s2 + $0x10] sm:$0xff] }
  0xf3   : > { %v1089_v49 = vpop.eup %1088 }
  0xf4   : > { %544 = vrot.lane.b32.xlu1 %v1195_v16, %s1121_s7  ;;  %v490_v52 = vsel %vm450_vm6, %v458_v50, %v1089_v49  ;;  %v1091_v53 = vpop.eup %1090 }
  0xf5   : > { %500 = vxpose.xlu0.b32.cont [3/8] (short) (narrow) %v488_v45, 32  ;;  %v491_v55 = vsel %vm451_vm7, %v459_v54, %v1091_v53 }
  0xf7   : > { %v1093_v56 = vpop.eup %1092 }
  0xf8   : > { %542 = vrot.lane.b32.xlu1 %v1197_v19, %s1121_s7  ;;  %v492_v58 = vsel %vm452_vm8, %v460_v57, %v1093_v56  ;;  %v1095_v59 = vpop.eup %1094 }
  0xf9   : > { %501 = vxpose.xlu0.b32.cont [4/8] (short) (narrow) %v489_v48, 32  ;;  %v493_v61 = vsel %vm453_vm9, %v461_v60, %v1095_v59 }
  0xfc   : > { %540 = vrot.lane.b32.xlu1 %v1189_v12, %s1121_s7 }
  0xfd   : > { %502 = vxpose.xlu0.b32.cont [5/8] (short) (narrow) %v490_v52, 32 }
 0x100   : > { %538 = vrot.lane.b32.xlu1 %v1192_v14, %s1121_s7 }
 0x101   : > { %503 = vxpose.xlu0.b32.cont [6/8] (short) (narrow) %v491_v55, 32 }
 0x105   : > { %504 = vxpose.xlu0.b32.cont [7/8] (short) (narrow) %v492_v58, 32 }
 0x109   : > { %505 = vxpose.xlu0.b32.end [8/8] (short) (narrow) %v493_v61, 32 }
 0x132   : > { %1078 = vset.pattern.permute.xlu0 %v1123_v10 }
 0x156   : > { %v553_v62 = vpop.permute.xlu1 %552 }
 0x157   : > { %1005 = vmatprep.subr.mxu1 %v553_v62 }
 0x158   : > { %1006 = vmatpush3.msra.mxu1 %v553_v62 }
 0x15a   : > { %v551_v63 = vpop.permute.xlu1 %550 }
 0x15b   : > { %1007 = vmatprep.subr.mxu1 %v551_v63 }
 0x15c   : > { %1008 = vmatpush3.msra.mxu1 %v551_v63 }
 0x15e   : > { %v549_v0 = vpop.permute.xlu1 %548 }
 0x15f   : > { %1009 = vmatprep.subr.mxu1 %v549_v0 }
 0x160   : > { %1010 = vmatpush3.msra.mxu1 %v549_v0 }
 0x162   : > { %v547_v1 = vpop.permute.xlu1 %546 }
 0x163   : > { %1011 = vmatprep.subr.mxu1 %v547_v1 }
 0x164   : > { %1012 = vmatpush3.msra.mxu1 %v547_v1 }
 0x166   : > { %v545_v2 = vpop.permute.xlu1 %544 }
 0x167   : > { %1013 = vmatprep.subr.mxu1 %v545_v2 }
 0x168   : > { %1014 = vmatpush3.msra.mxu1 %v545_v2 }
 0x169   : > { %v514_v3 = vpop.trf.xlu0 }
 0x16a   : > { %v543_v4 = vpop.permute.xlu1 %542  ;;  %1021 = vmatprep.mubr.msk.f32.mxu1 %vm562_vm10, %v514_v3  ;;  %1043 = vmatprep.mubr.msk.f32.mxu0 %vm562_vm10, %v514_v3 }
 0x16b   : > { %1015 = vmatprep.subr.mxu1 %v543_v4 }
 0x16c   : > { %1016 = vmatpush3.msra.mxu1 %v543_v4 }
 0x16d   : > { %v515_v5 = vpop.trf.xlu0 }
 0x16e   : > { %v541_v6 = vpop.permute.xlu1 %540  ;;  %1044 = vmatmul.mubr.msk.f32.vlgmr.msra.gmra.mxu0 %vm562_vm10, %v515_v5 }
 0x16f   : > { %1017 = vmatprep.subr.mxu1 %v541_v6 }
 0x170   : > { %1018 = vmatpush3.msra.mxu1 %v541_v6 }
 0x171   : > { %v516_v7 = vpop.trf.xlu0 }
 0x172   : > { %v539_v8 = vpop.permute.xlu1 %538  ;;  %1046 = vmatprep.mubr.msk.f32.mxu0 %vm562_vm10, %v516_v7 }
 0x173   : > { %1019 = vmatprep.subr.mxu1 %v539_v8 }
 0x174   : > { %1020 = vmatpush3.msra.mxu1 %v539_v8 }
 0x175   : > { %1022 = vmatmul.mubr.msk.f32.vlgmr.msra.gmra.mxu1 %vm562_vm10, %v515_v5  ;;  %v517_v9 = vpop.trf.xlu0 }
 0x176   : > { %1024 = vmatprep.mubr.msk.f32.mxu1 %vm562_vm10, %v516_v7  ;;  %1047 = vmatmul.mubr.msk.f32.gmra.mxu0 %vm562_vm10, %v517_v9 }
 0x179   : > { %1025 = vmatmul.mubr.msk.f32.gmra.mxu1 %vm562_vm10, %v517_v9 }
 0x22e   : > { %v1045_v12 = vpop.f32.mrf.mxu0 }
 0x22f   : > { %v758_v14 = vadd.f32 %v1045_v12, %v669_v11 }
 0x230   : > { %v738_v15 = vpop.f32.mrf.mxu0 }
 0x231   : > { %763 = vst.msk [vmem:[#allocation3 + $0x8] sm:$0xff] %vm299_vm5, %v758_v14  ;;  %v757_v16 = vadd.f32 %v738_v15, %v668_v13 }
 0x233   : > { %762 = vst.msk [vmem:[#allocation3] sm:$0xff] %vm299_vm5, %v757_v16 }
 0x235   : > { %v1023_v19 = vpop.f32.mrf.mxu1 }
 0x236   : > { %v661_v21 = vadd.f32 %v1023_v19, %v495_v17  ;;  %v1048_v22 = vpop.f32.mrf.mxu0 }
 0x237   : > { %v760_v24 = vadd.f32 %v1048_v22, %v671_v18  ;;  %v641_v25 = vpop.f32.mrf.mxu1 }
 0x238   : > { %665 = vst.msk [vmem:[#allocation2 + $0x8] sm:$0xff] %vm294_vm0, %v661_v21  ;;  %v660_v27 = vadd.f32 %v641_v25, %v494_v20  ;;  %v748_v28 = vpop.f32.mrf.mxu0  ;;  %v790_v29 = vld [vmem:[#allocation3 + $0x8] sm:$0xff] }
 0x239   : > { %765 = vst.msk [vmem:[#allocation3 + $0x18] sm:$0xff] %vm299_vm5, %v760_v24  ;;  %v759_v30 = vadd.f32 %v748_v28, %v670_v23  ;;  %800 = vperm.xlu1 %1079, %v790_v29   ;;  %v1026_v31 = vpop.f32.mrf.mxu1 }
 0x23a   : > { %664 = vst.msk [vmem:[#allocation2] sm:$0xff] %vm294_vm0, %v660_v27  ;;  %v663_v33 = vadd.f32 %v1026_v31, %v497_v26  ;;  %v789_v34 = vld [vmem:[#allocation3] sm:$0xff] }
 0x23b   : > { %764 = vst.msk [vmem:[#allocation3 + $0x10] sm:$0xff] %vm299_vm5, %v759_v30  ;;  %795 = vperm.xlu0 %1078, %v789_v34   ;;  %v651_v35 = vpop.f32.mrf.mxu1 }
 0x23c   : > { %667 = vst.msk [vmem:[#allocation2 + $0x18] sm:$0xff] %vm294_vm0, %v663_v33  ;;  %v662_v36 = vadd.f32 %v651_v35, %v496_v32 }
 0x23e   : > { %666 = vst.msk [vmem:[#allocation2 + $0x10] sm:$0xff] %vm294_vm0, %v662_v36 }
 0x23f   : > { %v774_v38 = vld [vmem:[#allocation2 + $0x8] sm:$0xff] }
 0x240   : > { %v778_v40 = vmul.f32 %v774_v38, %v770_v37  ;;  %v792_v51 = vld [vmem:[#allocation3 + $0x18] sm:$0xff] }
 0x241   : > { %v773_v41 = vld [vmem:[#allocation2] sm:$0xff] }
 0x242   : > { %v791_v43 = vld [vmem:[#allocation3 + $0x10] sm:$0xff]  ;;  %v782_v44 = vmul.f32 0.015625, %v778_v40  ;;  %v777_v45 = vmul.f32 %v773_v41, %v769_v39 }
 0x243   : > { %805 = vperm.xlu1 %1079, %v791_v43   ;;  %v776_v47 = vld [vmem:[#allocation2 + $0x18] sm:$0xff] }
 0x244   : > { %v781_v48 = vmul.f32 0.015625, %v777_v45  ;;  %v780_v49 = vmul.f32 %v776_v47, %v772_v42  ;;  %786 = vst.msk [vmem:[%s1285_s21 + $0x8] sm:$0xff] %vm294_vm0, %v782_v44 }
 0x245   : > { %v775_v50 = vld [vmem:[#allocation2 + $0x10] sm:$0xff] }
 0x246   : > { %v779_v52 = vmul.f32 %v775_v50, %v771_v46  ;;  %v784_v53 = vmul.f32 0.015625, %v780_v49  ;;  %785 = vst.msk [vmem:[%s1285_s21] sm:$0xff] %vm294_vm0, %v781_v48 }
 0x247   : > { %810 = vperm.xlu1 %1079, %v792_v51  }
 0x248   : > { %v783_v54 = vmul.f32 0.015625, %v779_v52  ;;  %788 = vst.msk [vmem:[%s1285_s21 + $0x18] sm:$0xff] %vm294_vm0, %v784_v53 }
 0x24a   : > { %787 = vst.msk [vmem:[%s1285_s21 + $0x10] sm:$0xff] %vm294_vm0, %v783_v54 }
 0x2b4   : > { %v801_v55 = vpop.permute.xlu1 %800 }
 0x2b5   : > { %v814_v56 = vmul.f32 %v801_v55, %v770_v37 }
 0x2b6   : > { %v796_v57 = vpop.permute.xlu0 %795 }
 0x2b7   : > { %v818_v58 = vmul.f32 0.015625, %v814_v56  ;;  %v813_v59 = vmul.f32 %v796_v57, %v769_v39 }
 0x2b9   : > { %827 = vrot.lane.b32.xlu1 %v818_v58, %s1124_s23  ;;  %v817_v60 = vmul.f32 0.015625, %v813_v59 }
 0x2bd   : > { %825 = vrot.lane.b32.xlu1 %v817_v60, %s1124_s23 }
 0x2be   : > { %v806_v61 = vpop.permute.xlu1 %805 }
 0x2bf   : > { %v815_v62 = vmul.f32 %v806_v61, %v771_v46 }
 0x2c1   : > { %v819_v63 = vmul.f32 0.015625, %v815_v62 }
 0x2c2   : > { %v811_v0 = vpop.permute.xlu1 %810 }
 0x2c3   : > { %v816_v1 = vmul.f32 %v811_v0, %v772_v42  ;;  %829 = vrot.lane.b32.xlu1 %v819_v63, %s1124_s23 }
 0x2c5   : > { %v820_v2 = vmul.f32 0.015625, %v816_v1 }
 0x2c7   : > { %831 = vrot.lane.b32.xlu1 %v820_v2, %s1124_s23 }
 0x32b   : > { %v828_v3 = vpop.permute.xlu1 %827 }
 0x32c   : > { %839 = vst.msk [vmem:[%s1285_s21 + $0x8] sm:$0xff] %vm837_vm11, %v828_v3 }
 0x32f   : > { %v826_v4 = vpop.permute.xlu1 %825 }
 0x330   : > { %838 = vst.msk [vmem:[%s1285_s21] sm:$0xff] %vm837_vm11, %v826_v4 }
 0x335   : > { %v830_v5 = vpop.permute.xlu1 %829 }
 0x336   : > { %840 = vst.msk [vmem:[%s1285_s21 + $0x10] sm:$0xff] %vm837_vm11, %v830_v5 }
 0x339   : > { %v832_v6 = vpop.permute.xlu1 %831 }
 0x33a   : > { %841 = vst.msk [vmem:[%s1285_s21 + $0x18] sm:$0xff] %vm837_vm11, %v832_v6 }
 0x33b PF: > { %s13_s14 = sadd.s32 1, %s1118_s14   ;;  %s1315_s12 = smov %s1114_s13 }
 0x33c   : > { %p10_p8 = scmp.ge.s32.totalorder %s13_s14, 6   ;;  %s1316_s13 = smov %s1318_s15 }
 0x33e   :  { %12 = sbr.rel (!%p10_p8) target bundleno = 2 (0x2), region = 70 }

// kernel: feature_attention.8
= control target key start
LH: loop header
LB: loop body
LE: loop exit
PB: predicated region body
PF: predicated region fallthrough
CT: control target
= control target key end

     0   :  { %s1045_s12 = smov 0   ;;  %s1047_s13 = smov 0   ;;  %s1208_s0 = inlined_call_operand.vmem [shape: f32[4,64,32], index: 0, kind: input, shape index: {}]   ;;  %s1209_s1 = inlined_call_operand.vmem [shape: f32[32,64], index: 1, kind: input, shape index: {}]   ;;  %s1210_s2 = inlined_call_operand.vmem [shape: f32[32,32], index: 2, kind: input, shape index: {}]   ;;  %s1211_s3 = inlined_call_operand.vmem [shape: f32[4,32,64], index: 3, kind: output, shape index: {}]  }
   0x1   :  { %s1049_s14 = smov 0  }
   0x2 LB: > { %s25_s15 = sadd.s32 1, %s1014_s13  ;;  %p824_p0 = scmp.ge.s32.totalorder %s1018_s14, 1  ;;  %s1018_s14 = sphi %s1049_s14, %s13_s14   ;;  %s1014_s13 = sphi %s1047_s13, %s1213_s13   ;;  %s1010_s12 = sphi %s1045_s12, %s1212_s12  }
   0x3   : > { %p27_p1 = scmp.ge.s32.totalorder %s25_s15, 4  ;;  %p156_p2 = scmp.lt.s32.totalorder %s1018_s14, 5 }
   0x5   : > { %s1215_s15 = smov (%p27_p1, %s25_s15), 0  ;;  %p157_p3 = pnand %p824_p0, %p156_p2 }
   0x6   : > { %p185_p4 = scmp.lt.s32.totalorder (!%p157_p3), %s1010_s12, 3  ;;  %s1021_s28 = smov (!%p157_p3), 96  }
   0x7   : > { %160 = sbr.rel (%p157_p3) target bundleno = 825 (0x339), region = 32  ;;  %s1024_s17 = smov (!%p157_p3), 32  }
   0xc   : > { %v224_v0 = vld [vmem:[%s1209_s1 + $0x18] sm:$0xff]  ;;  %v223_v1 = vld [vmem:[%s1209_s1 + $0x10] sm:$0xff]  ;;  %v222_v2 = vld [vmem:[%s1209_s1 + $0x8] sm:$0xff]  ;;  %s1217_s12 = smov (!%p185_p4, %s1010_s12), 3  ;;  %vm203_vm0 = vcmask 261120   ;;  %v1020_v21 = vmov 1.0  }
   0xd   : > { %885 = vmatprep.subr.mxu0 %v224_v0  ;;  %v221_v3 = vld [vmem:[%s1209_s1] sm:$0xff]  ;;  %s847_s24 = sshll.u32 %s1217_s12, 6  ;;  %vm208_vm5 = vcmask 7168   ;;  %v1022_v51 = vmov 0.0   ;;  %vm471_vm10 = vcmask 523264   ;;  %s848_s4 = sshll.u32 %s1217_s12, 5 }
   0xe   : > { %886 = vmatpush3.msra.mxu0 %v224_v0  ;;  %s192_s27 = scalar_lea.vmem %s1208_s0, %s847_s24  ;;  %210 = vst.msk [vmem:[#allocation3 + $0x8] sm:$0xff] %vm208_vm5, %v1022_v51  ;;  %209 = vst.msk [vmem:[#allocation3] sm:$0xff] %vm208_vm5, %v1022_v51  ;;  %s1182_s11 = scalar_lea.vmem %s1211_s3, %s848_s4  ;;  %vm746_vm11 = vcmask 523520  }
   0xf   : > { %887 = vmatprep.subr.mxu0 %v223_v1  ;;  %v213_v4 = vld [vmem:[%s192_s27] sm:$0xff]  ;;  %v214_v5 = vld [vmem:[%s192_s27 + $0x8] sm:$0xff]  ;;  %v215_v6 = vld [vmem:[%s192_s27 + $0x10] sm:$0xff]  ;;  %204 = vst.msk [vmem:[#allocation2] sm:$0xff] %vm203_vm0, %v1022_v51 }
  0x10   : > { %888 = vmatpush3.msra.mxu0 %v223_v1  ;;  %893 = vmatprep.mubr.msk.f32.mxu0 %vm203_vm0, %v213_v4  ;;  %v216_v7 = vld [vmem:[%s192_s27 + $0x18] sm:$0xff]  ;;  %v217_v8 = vld [vmem:[%s192_s27 + $0x20] sm:$0xff]  ;;  %v218_v9 = vld [vmem:[%s192_s27 + $0x28] sm:$0xff]  ;;  %205 = vst.msk [vmem:[#allocation2 + $0x8] sm:$0xff] %vm203_vm0, %v1022_v51 }
  0x11   : > { %889 = vmatprep.subr.mxu0 %v222_v2  ;;  %v219_v10 = vld [vmem:[%s192_s27 + $0x30] sm:$0xff]  ;;  %v220_v11 = vld [vmem:[%s192_s27 + $0x38] sm:$0xff]  ;;  %206 = vst.msk [vmem:[#allocation2 + $0x10] sm:$0xff] %vm203_vm0, %v1022_v51  ;;  %207 = vst.msk [vmem:[#allocation2 + $0x18] sm:$0xff] %vm203_vm0, %v1022_v51 }
  0x12   : > { %890 = vmatpush3.msra.mxu0 %v222_v2  ;;  %211 = vst.msk [vmem:[#allocation3 + $0x10] sm:$0xff] %vm208_vm5, %v1022_v51  ;;  %212 = vst.msk [vmem:[#allocation3 + $0x18] sm:$0xff] %vm208_vm5, %v1022_v51 }
  0x13   : > { %891 = vmatprep.subr.mxu0 %v221_v3 }
  0x14   : > { %892 = vmatpush3.msra.mxu0 %v221_v3 }
  0x15   : > { %894 = vmatmul.mubr.msk.f32.vlgmr.msra.gmra.mxu0 %vm203_vm0, %v214_v5  ;;  %927 = vmatprep.subr.mxu0 %v1020_v21 }
  0x16   : > { %896 = vmatprep.mubr.msk.f32.mxu0 %vm203_vm0, %v215_v6  ;;  %928 = vmatpush3.msra.mxu0 %v1020_v21 }
  0x17   : > { %929 = vmatprep.subr.mxu0 %v1020_v21 }
  0x18   : > { %930 = vmatpush3.msra.mxu0 %v1020_v21 }
  0x19   : > { %897 = vmatmul.mubr.msk.f32.gmra.mxu0 %vm203_vm0, %v216_v7  ;;  %931 = vmatprep.subr.mxu0 %v1020_v21 }
  0x1a   : > { %899 = vmatprep.mubr.msk.f32.mxu0 %vm203_vm0, %v217_v8  ;;  %932 = vmatpush3.msra.mxu0 %v1020_v21 }
  0x1b   : > { %933 = vmatprep.subr.mxu0 %v1020_v21 }
  0x1c   : > { %934 = vmatpush3.msra.mxu0 %v1020_v21 }
  0x1d   : > { %900 = vmatmul.mubr.msk.f32.gmra.mxu0 %vm203_vm0, %v218_v9  ;;  %935 = vmatprep.subr.mxu0 %v1020_v21 }
  0x1e   : > { %902 = vmatprep.mubr.msk.f32.mxu0 %vm203_vm0, %v219_v10  ;;  %936 = vmatpush3.msra.mxu0 %v1020_v21  ;;  %v1023_v10 = vmov 0  }
  0x1f   : > { %937 = vmatprep.subr.mxu0 %v1020_v21  ;;  %979 = vset.pattern.permute.xlu1 %v1023_v10 }
  0x20   : > { %938 = vmatpush3.msra.mxu0 %v1020_v21 }
  0x21   : > { %903 = vmatmul.mubr.msk.f32.gmra.mxu0 %vm203_vm0, %v220_v11  ;;  %939 = vmatprep.subr.mxu0 %v1020_v21  ;;  %v578_v11 = vld [vmem:[#allocation3 + $0x8] sm:$0xff] }
  0x22   : > { %940 = vmatpush3.msra.mxu0 %v1020_v21 }
  0x23   : > { %941 = vmatprep.subr.mxu0 %v1020_v21 }
  0x24   : > { %942 = vmatpush3.msra.mxu0 %v1020_v21 }
  0xd5   : > { %v1089_v12 = vpop.f32.mrf.mxu0 }
  0xd6   : > { %v372_v13 = vmin.f32 %v1089_v12, 0.0  ;;  %v364_v38 = vadd.f32 1.0, %v1089_v12  ;;  %vm356_vm2 = vcmp.gt.f32.partialorder %v1089_v12, 0.0 }
  0xd7   : > { %v1092_v14 = vpop.f32.mrf.mxu0 }
  0xd8   : > { %v371_v15 = vmin.f32 %v1092_v14, 0.0  ;;  %v381_v17 = vmul.f32 1.442695, %v372_v13  ;;  %v363_v32 = vadd.f32 1.0, %v1092_v14  ;;  %vm355_vm1 = vcmp.gt.f32.partialorder %v1092_v14, 0.0  ;;  %v577_v13 = vld [vmem:[#allocation3] sm:$0xff] }
  0xd9   : > { %v1095_v16 = vpop.f32.mrf.mxu0 }
  0xda   : > { %v379_v18 = vmul.f32 1.442695, %v371_v15  ;;  %v374_v23 = vmin.f32 %v1095_v16, 0.0  ;;  %v366_v47 = vadd.f32 1.0, %v1095_v16  ;;  %vm358_vm4 = vcmp.gt.f32.partialorder %v1095_v16, 0.0 }
  0xdb   : > { %v1097_v19 = vpop.f32.mrf.mxu0 }
  0xdc   : > { %980 = vpow2.f32 %v379_v18  ;;  %v373_v20 = vmin.f32 %v1097_v19, 0.0  ;;  %v385_v27 = vmul.f32 1.442695, %v374_v23  ;;  %v365_v43 = vadd.f32 1.0, %v1097_v19  ;;  %v580_v18 = vld [vmem:[#allocation3 + $0x18] sm:$0xff]  ;;  %v579_v23 = vld [vmem:[#allocation3 + $0x10] sm:$0xff] }
  0xdd   : > { %v1100_v22 = vpop.f32.mrf.mxu0  ;;  %982 = vpow2.f32 %v381_v17  ;;  %vm357_vm3 = vcmp.gt.f32.partialorder %v1097_v19, 0.0  ;;  %v404_v17 = vld [vmem:[#allocation2 + $0x8] sm:$0xff] }
  0xde   : > { %v383_v24 = vmul.f32 1.442695, %v373_v20  ;;  %v376_v30 = vmin.f32 %v1100_v22, 0.0  ;;  %v368_v54 = vadd.f32 1.0, %v1100_v22  ;;  %vm360_vm7 = vcmp.gt.f32.partialorder %v1100_v22, 0.0  ;;  %v403_v20 = vld [vmem:[#allocation2] sm:$0xff] }
  0xdf   : > { %v1103_v25 = vpop.f32.mrf.mxu0 }
  0xe0   : > { %984 = vpow2.f32 %v383_v24  ;;  %v375_v28 = vmin.f32 %v1103_v25, 0.0  ;;  %v389_v34 = vmul.f32 1.442695, %v376_v30  ;;  %v367_v50 = vadd.f32 1.0, %v1103_v25 }
  0xe1   : > { %v1105_v26 = vpop.f32.mrf.mxu0  ;;  %986 = vpow2.f32 %v385_v27  ;;  %vm359_vm6 = vcmp.gt.f32.partialorder %v1103_v25, 0.0 }
  0xe2   : > { %461 = vrot.lane.b32.xlu1 %v1105_v26, %s1021_s28  ;;  %v387_v31 = vmul.f32 1.442695, %v375_v28  ;;  %v378_v39 = vmin.f32 %v1105_v26, 0.0  ;;  %v370_v60 = vadd.f32 1.0, %v1105_v26  ;;  %vm362_vm9 = vcmp.gt.f32.partialorder %v1105_v26, 0.0  ;;  %v406_v26 = vld [vmem:[#allocation2 + $0x18] sm:$0xff] }
  0xe3   : > { %v1110_v29 = vpop.f32.mrf.mxu0 }
  0xe4   : > { %988 = vpow2.f32 %v387_v31  ;;  %v377_v35 = vmin.f32 %v1110_v29, 0.0  ;;  %v393_v44 = vmul.f32 1.442695, %v378_v39  ;;  %v369_v57 = vadd.f32 1.0, %v1110_v29  ;;  %v678_v39 = vld [vmem:[%s1210_s2] sm:$0xff] }
  0xe5   : > { %990 = vpow2.f32 %v389_v34  ;;  %vm361_vm8 = vcmp.gt.f32.partialorder %v1110_v29, 0.0 }
  0xe6   : > { %459 = vrot.lane.b32.xlu1 %v1110_v29, %s1021_s28  ;;  %v391_v40 = vmul.f32 1.442695, %v377_v35 }
  0xe8   : > { %992 = vpow2.f32 %v391_v40 }
  0xe9   : > { %v981_v33 = vpop.eup %980  ;;  %994 = vpow2.f32 %v393_v44 }
  0xea   : > { %457 = vrot.lane.b32.xlu1 %v1100_v22, %s1021_s28  ;;  %v395_v36 = vsel %vm355_vm1, %v363_v32, %v981_v33  ;;  %v983_v37 = vpop.eup %982  ;;  %v405_v32 = vld [vmem:[#allocation2 + $0x10] sm:$0xff] }
  0xeb   : > { %407 = vxpose.xlu0.b32.start [1/8] (short) (narrow) %v395_v36, 32  ;;  %v396_v41 = vsel %vm356_vm2, %v364_v38, %v983_v37  ;;  %v679_v37 = vld [vmem:[%s1210_s2 + $0x8] sm:$0xff] }
  0xed   : > { %v985_v42 = vpop.eup %984 }
  0xee   : > { %455 = vrot.lane.b32.xlu1 %v1103_v25, %s1021_s28  ;;  %v397_v45 = vsel %vm357_vm3, %v365_v43, %v985_v42  ;;  %v987_v46 = vpop.eup %986  ;;  %v681_v42 = vld [vmem:[%s1210_s2 + $0x18] sm:$0xff] }
  0xef   : > { %408 = vxpose.xlu0.b32.cont [2/8] (short) (narrow) %v396_v41, 32  ;;  %v398_v48 = vsel %vm358_vm4, %v366_v47, %v987_v46  ;;  %v680_v46 = vld [vmem:[%s1210_s2 + $0x10] sm:$0xff] }
  0xf1   : > { %v989_v49 = vpop.eup %988 }
  0xf2   : > { %453 = vrot.lane.b32.xlu1 %v1095_v16, %s1021_s28  ;;  %v399_v52 = vsel %vm359_vm6, %v367_v50, %v989_v49  ;;  %v991_v53 = vpop.eup %990 }
  0xf3   : > { %409 = vxpose.xlu0.b32.cont [3/8] (short) (narrow) %v397_v45, 32  ;;  %v400_v55 = vsel %vm360_vm7, %v368_v54, %v991_v53 }
  0xf5   : > { %v993_v56 = vpop.eup %992 }
  0xf6   : > { %451 = vrot.lane.b32.xlu1 %v1097_v19, %s1021_s28  ;;  %v401_v58 = vsel %vm361_vm8, %v369_v57, %v993_v56  ;;  %v995_v59 = vpop.eup %994 }
  0xf7   : > { %410 = vxpose.xlu0.b32.cont [4/8] (short) (narrow) %v398_v48, 32  ;;  %v402_v61 = vsel %vm362_vm9, %v370_v60, %v995_v59 }
  0xfa   : > { %449 = vrot.lane.b32.xlu1 %v1089_v12, %s1021_s28 }
  0xfb   : > { %411 = vxpose.xlu0.b32.cont [5/8] (short) (narrow) %v399_v52, 32 }
  0xfe   : > { %447 = vrot.lane.b32.xlu1 %v1092_v14, %s1021_s28 }
  0xff   : > { %412 = vxpose.xlu0.b32.cont [6/8] (short) (narrow) %v400_v55, 32 }
 0x103   : > { %413 = vxpose.xlu0.b32.cont [7/8] (short) (narrow) %v401_v58, 32 }
 0x107   : > { %414 = vxpose.xlu0.b32.end [8/8] (short) (narrow) %v402_v61, 32 }
 0x130   : > { %978 = vset.pattern.permute.xlu0 %v1023_v10 }
 0x154   : > { %v462_v62 = vpop.permute.xlu1 %461 }
 0x155   : > { %905 = vmatprep.subr.mxu1 %v462_v62 }
 0x156   : > { %906 = vmatpush3.msra.mxu1 %v462_v62 }
 0x158   : > { %v460_v63 = vpop.permute.xlu1 %459 }
 0x159   : > { %907 = vmatprep.subr.mxu1 %v460_v63 }
 0x15a   : > { %908 = vmatpush3.msra.mxu1 %v460_v63 }
 0x15c   : > { %v458_v0 = vpop.permute.xlu1 %457 }
 0x15d   : > { %909 = vmatprep.subr.mxu1 %v458_v0 }
 0x15e   : > { %910 = vmatpush3.msra.mxu1 %v458_v0 }
 0x160   : > { %v456_v1 = vpop.permute.xlu1 %455 }
 0x161   : > { %911 = vmatprep.subr.mxu1 %v456_v1 }
 0x162   : > { %912 = vmatpush3.msra.mxu1 %v456_v1 }
 0x164   : > { %v454_v2 = vpop.permute.xlu1 %453 }
 0x165   : > { %913 = vmatprep.subr.mxu1 %v454_v2 }
 0x166   : > { %914 = vmatpush3.msra.mxu1 %v454_v2 }
 0x167   : > { %v423_v3 = vpop.trf.xlu0 }
 0x168   : > { %v452_v4 = vpop.permute.xlu1 %451  ;;  %921 = vmatprep.mubr.msk.f32.mxu1 %vm471_vm10, %v423_v3  ;;  %943 = vmatprep.mubr.msk.f32.mxu0 %vm471_vm10, %v423_v3 }
 0x169   : > { %915 = vmatprep.subr.mxu1 %v452_v4 }
 0x16a   : > { %916 = vmatpush3.msra.mxu1 %v452_v4 }
 0x16b   : > { %v424_v5 = vpop.trf.xlu0 }
 0x16c   : > { %v450_v6 = vpop.permute.xlu1 %449  ;;  %944 = vmatmul.mubr.msk.f32.vlgmr.msra.gmra.mxu0 %vm471_vm10, %v424_v5 }
 0x16d   : > { %917 = vmatprep.subr.mxu1 %v450_v6 }
 0x16e   : > { %918 = vmatpush3.msra.mxu1 %v450_v6 }
 0x16f   : > { %v425_v7 = vpop.trf.xlu0 }
 0x170   : > { %v448_v8 = vpop.permute.xlu1 %447  ;;  %946 = vmatprep.mubr.msk.f32.mxu0 %vm471_vm10, %v425_v7 }
 0x171   : > { %919 = vmatprep.subr.mxu1 %v448_v8 }
 0x172   : > { %920 = vmatpush3.msra.mxu1 %v448_v8 }
 0x173   : > { %922 = vmatmul.mubr.msk.f32.vlgmr.msra.gmra.mxu1 %vm471_vm10, %v424_v5  ;;  %v426_v9 = vpop.trf.xlu0 }
 0x174   : > { %924 = vmatprep.mubr.msk.f32.mxu1 %vm471_vm10, %v425_v7  ;;  %947 = vmatmul.mubr.msk.f32.gmra.mxu0 %vm471_vm10, %v426_v9 }
 0x177   : > { %925 = vmatmul.mubr.msk.f32.gmra.mxu1 %vm471_vm10, %v426_v9 }
 0x22c   : > { %v945_v12 = vpop.f32.mrf.mxu0 }
 0x22d   : > { %v667_v14 = vadd.f32 %v945_v12, %v578_v11 }
 0x22e   : > { %v647_v15 = vpop.f32.mrf.mxu0 }
 0x22f   : > { %672 = vst.msk [vmem:[#allocation3 + $0x8] sm:$0xff] %vm208_vm5, %v667_v14  ;;  %v666_v16 = vadd.f32 %v647_v15, %v577_v13 }
 0x231   : > { %671 = vst.msk [vmem:[#allocation3] sm:$0xff] %vm208_vm5, %v666_v16 }
 0x233   : > { %v923_v19 = vpop.f32.mrf.mxu1 }
 0x234   : > { %v570_v21 = vadd.f32 %v923_v19, %v404_v17  ;;  %v948_v22 = vpop.f32.mrf.mxu0 }
 0x235   : > { %v669_v24 = vadd.f32 %v948_v22, %v580_v18  ;;  %v550_v25 = vpop.f32.mrf.mxu1 }
 0x236   : > { %574 = vst.msk [vmem:[#allocation2 + $0x8] sm:$0xff] %vm203_vm0, %v570_v21  ;;  %v569_v27 = vadd.f32 %v550_v25, %v403_v20  ;;  %v657_v28 = vpop.f32.mrf.mxu0  ;;  %v699_v29 = vld [vmem:[#allocation3 + $0x8] sm:$0xff] }
 0x237   : > { %674 = vst.msk [vmem:[#allocation3 + $0x18] sm:$0xff] %vm208_vm5, %v669_v24  ;;  %v668_v30 = vadd.f32 %v657_v28, %v579_v23  ;;  %709 = vperm.xlu1 %979, %v699_v29   ;;  %v926_v31 = vpop.f32.mrf.mxu1 }
 0x238   : > { %573 = vst.msk [vmem:[#allocation2] sm:$0xff] %vm203_vm0, %v569_v27  ;;  %v572_v33 = vadd.f32 %v926_v31, %v406_v26  ;;  %v698_v34 = vld [vmem:[#allocation3] sm:$0xff] }
 0x239   : > { %673 = vst.msk [vmem:[#allocation3 + $0x10] sm:$0xff] %vm208_vm5, %v668_v30  ;;  %704 = vperm.xlu0 %978, %v698_v34   ;;  %v560_v35 = vpop.f32.mrf.mxu1 }
 0x23a   : > { %576 = vst.msk [vmem:[#allocation2 + $0x18] sm:$0xff] %vm203_vm0, %v572_v33  ;;  %v571_v36 = vadd.f32 %v560_v35, %v405_v32 }
 0x23c   : > { %575 = vst.msk [vmem:[#allocation2 + $0x10] sm:$0xff] %vm203_vm0, %v571_v36 }
 0x23d   : > { %v683_v38 = vld [vmem:[#allocation2 + $0x8] sm:$0xff] }
 0x23e   : > { %v687_v40 = vmul.f32 %v683_v38, %v679_v37  ;;  %v701_v51 = vld [vmem:[#allocation3 + $0x18] sm:$0xff] }
 0x23f   : > { %v682_v41 = vld [vmem:[#allocation2] sm:$0xff] }
 0x240   : > { %v700_v43 = vld [vmem:[#allocation3 + $0x10] sm:$0xff]  ;;  %v691_v44 = vmul.f32 0.015625, %v687_v40  ;;  %v686_v45 = vmul.f32 %v682_v41, %v678_v39 }
 0x241   : > { %714 = vperm.xlu1 %979, %v700_v43   ;;  %v685_v47 = vld [vmem:[#allocation2 + $0x18] sm:$0xff] }
 0x242   : > { %v690_v48 = vmul.f32 0.015625, %v686_v45  ;;  %v689_v49 = vmul.f32 %v685_v47, %v681_v42  ;;  %695 = vst.msk [vmem:[%s1182_s11 + $0x8] sm:$0xff] %vm203_vm0, %v691_v44 }
 0x243   : > { %v684_v50 = vld [vmem:[#allocation2 + $0x10] sm:$0xff] }
 0x244   : > { %v688_v52 = vmul.f32 %v684_v50, %v680_v46  ;;  %v693_v53 = vmul.f32 0.015625, %v689_v49  ;;  %694 = vst.msk [vmem:[%s1182_s11] sm:$0xff] %vm203_vm0, %v690_v48 }
 0x245   : > { %719 = vperm.xlu1 %979, %v701_v51  }
 0x246   : > { %v692_v54 = vmul.f32 0.015625, %v688_v52  ;;  %697 = vst.msk [vmem:[%s1182_s11 + $0x18] sm:$0xff] %vm203_vm0, %v693_v53 }
 0x248   : > { %696 = vst.msk [vmem:[%s1182_s11 + $0x10] sm:$0xff] %vm203_vm0, %v692_v54 }
 0x2b2   : > { %v710_v55 = vpop.permute.xlu1 %709 }
 0x2b3   : > { %v723_v56 = vmul.f32 %v710_v55, %v679_v37 }
 0x2b4   : > { %v705_v57 = vpop.permute.xlu0 %704 }
 0x2b5   : > { %v727_v58 = vmul.f32 0.015625, %v723_v56  ;;  %v722_v59 = vmul.f32 %v705_v57, %v678_v39 }
 0x2b7   : > { %736 = vrot.lane.b32.xlu1 %v727_v58, %s1024_s17  ;;  %v726_v60 = vmul.f32 0.015625, %v722_v59 }
 0x2bb   : > { %734 = vrot.lane.b32.xlu1 %v726_v60, %s1024_s17 }
 0x2bc   : > { %v715_v61 = vpop.permute.xlu1 %714 }
 0x2bd   : > { %v724_v62 = vmul.f32 %v715_v61, %v680_v46 }
 0x2bf   : > { %v728_v63 = vmul.f32 0.015625, %v724_v62 }
 0x2c0   : > { %v720_v0 = vpop.permute.xlu1 %719 }
 0x2c1   : > { %v725_v1 = vmul.f32 %v720_v0, %v681_v42  ;;  %738 = vrot.lane.b32.xlu1 %v728_v63, %s1024_s17 }
 0x2c3   : > { %v729_v2 = vmul.f32 0.015625, %v725_v1 }
 0x2c5   : > { %740 = vrot.lane.b32.xlu1 %v729_v2, %s1024_s17 }
 0x329   : > { %v737_v3 = vpop.permute.xlu1 %736 }
 0x32a   : > { %748 = vst.msk [vmem:[%s1182_s11 + $0x8] sm:$0xff] %vm746_vm11, %v737_v3 }
 0x32d   : > { %v735_v4 = vpop.permute.xlu1 %734 }
 0x32e   : > { %747 = vst.msk [vmem:[%s1182_s11] sm:$0xff] %vm746_vm11, %v735_v4 }
 0x333   : > { %v739_v5 = vpop.permute.xlu1 %738 }
 0x334   : > { %749 = vst.msk [vmem:[%s1182_s11 + $0x10] sm:$0xff] %vm746_vm11, %v739_v5 }
 0x337   : > { %v741_v6 = vpop.permute.xlu1 %740 }
 0x338   : > { %750 = vst.msk [vmem:[%s1182_s11 + $0x18] sm:$0xff] %vm746_vm11, %v741_v6 }
 0x339 PF: > { %s13_s14 = sadd.s32 1, %s1018_s14   ;;  %s1212_s12 = smov %s1014_s13 }
 0x33a   : > { %p10_p5 = scmp.ge.s32.totalorder %s13_s14, 6   ;;  %s1213_s13 = smov %s1215_s15 }
 0x33c   :  { %12 = sbr.rel (!%p10_p5) target bundleno = 2 (0x2), region = 70 }

// kernel: feature_attention.9
= control target key start
LH: loop header
LB: loop body
LE: loop exit
PB: predicated region body
PF: predicated region fallthrough
CT: control target
= control target key end

     0   :  { %s2192_s17 = smov 0   ;;  %s2194_s18 = smov 0   ;;  %s2548_s0 = inlined_call_operand.vmem [shape: f32[4,64,32], index: 0, kind: input, shape index: {}]   ;;  %s2549_s1 = inlined_call_operand.vmem [shape: f32[4,32,64], index: 1, kind: input, shape index: {}]   ;;  %s2550_s2 = inlined_call_operand.vmem [shape: f32[32,32], index: 2, kind: input, shape index: {}]   ;;  %s2551_s3 = inlined_call_operand.vmem [shape: f32[32,32], index: 3, kind: input, shape index: {}]   ;;  %s2552_s4 = inlined_call_operand.vmem [shape: f32[32,64], index: 4, kind: input, shape index: {}]   ;;  %s2553_s5 = inlined_call_operand.vmem [shape: f32[32,64], index: 5, kind: input, shape index: {}]   ;;  %s2554_s6 = inlined_call_operand.vmem [shape: f32[64,32], index: 6, kind: input, shape index: {}]   ;;  %s2555_s7 = inlined_call_operand.vmem [shape: f32[1,32], index: 7, kind: input, shape index: {}]   ;;  %s2556_s8 = inlined_call_operand.vmem [shape: f32[1,32], index: 8, kind: input, shape index: {}]   ;;  %s2557_s9 = inlined_call_operand.vmem [shape: f32[1,32], index: 9, kind: input, shape index: {}]   ;;  %s2558_s10 = inlined_call_operand.vmem [shape: f32[1,32], index: 10, kind: input, shape index: {}]   ;;  %s2559_s11 = inlined_call_operand.vmem [shape: f32[4,64,32], index: 11, kind: output, shape index: {}]  }
   0x1   :  { %s2196_s19 = smov 0  }
   0x2 LB: > { %s33_s20 = sadd.s32 1, %s2125_s18  ;;  %p1742_p0 = scmp.ge.s32.totalorder %s2129_s19, 1  ;;  %s2129_s19 = sphi %s2196_s19, %s21_s19   ;;  %s2125_s18 = sphi %s2194_s18, %s2561_s18   ;;  %s2121_s17 = sphi %s2192_s17, %s2560_s17  }
   0x3   : > { %p35_p1 = scmp.ge.s32.totalorder %s33_s20, 4  ;;  %p368_p2 = scmp.lt.s32.totalorder %s2129_s19, 5 }
   0x5   : > { %s2563_s20 = smov (%p35_p1, %s33_s20), 0  ;;  %p369_p3 = pnand %p1742_p0, %p368_p2 }
   0x6   : > { %p422_p4 = scmp.lt.s32.totalorder (!%p369_p3), %s2121_s17, 3  ;;  %s2131_s12 = smov (!%p369_p3), 96  }
   0x7   : > { %372 = sbr.rel (%p369_p3) target bundleno = 1794 (0x702), region = 64 }
   0xc   : > { %v457_v0 = vld [vmem:[%s2550_s2 + $0x18] sm:$0xff]  ;;  %v456_v1 = vld [vmem:[%s2550_s2 + $0x10] sm:$0xff]  ;;  %v455_v2 = vld [vmem:[%s2550_s2 + $0x8] sm:$0xff]  ;;  %s2565_s17 = smov (!%p422_p4, %s2121_s17), 3  ;;  %vm458_vm0 = vcmask 261120   ;;  %vm1359_vm9 = vcmask 523264  }
   0xd   : > { %1882 = vmatprep.subr.mxu0 %v457_v0  ;;  %v454_v3 = vld [vmem:[%s2550_s2] sm:$0xff]  ;;  %s1803_s29 = sshll.u32 %s2565_s17, 6  ;;  %s1804_s14 = sshll.u32 %s2565_s17, 5 }
   0xe   : > { %1883 = vmatpush3.msra.mxu0 %v457_v0  ;;  %s2230_s13 = scalar_lea.vmem %s2548_s0, %s1803_s29  ;;  %s435_s21 = scalar_lea.vmem %s2549_s1, %s1804_s14  ;;  %v836_v0 = vld [vmem:[%s2551_s3 + $0x18] sm:$0xff] }
   0xf   : > { %1884 = vmatprep.subr.mxu0 %v456_v1  ;;  %v2233_v4 = vld [vmem:[%s2230_s13] sm:$0xff]  ;;  %v2236_v5 = vld [vmem:[%s2230_s13 + $0x8] sm:$0xff]  ;;  %v2241_v6 = vld [vmem:[%s2230_s13 + $0x10] sm:$0xff] }
  0x10   : > { %1885 = vmatpush3.msra.mxu0 %v456_v1  ;;  %1890 = vmatprep.mubr.msk.f32.mxu0 %vm458_vm0, %v2233_v4  ;;  %v2248_v7 = vld [vmem:[%s2230_s13 + $0x18] sm:$0xff]  ;;  %v2251_v8 = vld [vmem:[%s2230_s13 + $0x20] sm:$0xff]  ;;  %v2258_v9 = vld [vmem:[%s2230_s13 + $0x28] sm:$0xff] }
  0x11   : > { %1886 = vmatprep.subr.mxu0 %v455_v2  ;;  %v2261_v10 = vld [vmem:[%s2230_s13 + $0x30] sm:$0xff]  ;;  %v2268_v11 = vld [vmem:[%s2230_s13 + $0x38] sm:$0xff]  ;;  %v637_v14 = vld [vmem:[%s435_s21 + $0x8] sm:$0xff] }
  0x12   : > { %1887 = vmatpush3.msra.mxu0 %v455_v2  ;;  %v639_v12 = vld [vmem:[%s435_s21 + $0x18] sm:$0xff]  ;;  %v638_v13 = vld [vmem:[%s435_s21 + $0x10] sm:$0xff]  ;;  %v636_v15 = vld [vmem:[%s435_s21] sm:$0xff]  ;;  %s2507_s21 = scalar_lea.vmem %s2559_s11, %s1803_s29 }
  0x13   : > { %1888 = vmatprep.subr.mxu0 %v454_v3  ;;  %1902 = vmatprep.subr.mxu1 %v639_v12  ;;  %v835_v1 = vld [vmem:[%s2551_s3 + $0x10] sm:$0xff]  ;;  %v834_v2 = vld [vmem:[%s2551_s3 + $0x8] sm:$0xff] }
  0x14   : > { %1889 = vmatpush3.msra.mxu0 %v454_v3  ;;  %1903 = vmatpush3.msra.mxu1 %v639_v12 }
  0x15   : > { %1891 = vmatmul.mubr.msk.f32.vlgmr.msra.gmra.mxu0 %vm458_vm0, %v2236_v5  ;;  %1904 = vmatprep.subr.mxu1 %v638_v13 }
  0x16   : > { %1893 = vmatprep.mubr.msk.f32.mxu0 %vm458_vm0, %v2241_v6  ;;  %1905 = vmatpush3.msra.mxu1 %v638_v13 }
  0x17   : > { %1906 = vmatprep.subr.mxu1 %v637_v14  ;;  %1922 = vmatprep.subr.mxu0 %v836_v0 }
  0x18   : > { %1907 = vmatpush3.msra.mxu1 %v637_v14  ;;  %1923 = vmatpush3.msra.mxu0 %v836_v0 }
  0x19   : > { %1894 = vmatmul.mubr.msk.f32.gmra.mxu0 %vm458_vm0, %v2248_v7  ;;  %1908 = vmatprep.subr.mxu1 %v636_v15 }
  0x1a   : > { %1896 = vmatprep.mubr.msk.f32.mxu0 %vm458_vm0, %v2251_v8  ;;  %1909 = vmatpush3.msra.mxu1 %v636_v15 }
  0x1b   : > { %1924 = vmatprep.subr.mxu0 %v835_v1 }
  0x1c   : > { %1925 = vmatpush3.msra.mxu0 %v835_v1 }
  0x1d   : > { %1897 = vmatmul.mubr.msk.f32.gmra.mxu0 %vm458_vm0, %v2258_v9  ;;  %1926 = vmatprep.subr.mxu0 %v834_v2 }
  0x1e   : > { %1899 = vmatprep.mubr.msk.f32.mxu0 %vm458_vm0, %v2261_v10  ;;  %1927 = vmatpush3.msra.mxu0 %v834_v2 }
  0x21   : > { %1900 = vmatmul.mubr.msk.f32.gmra.mxu0 %vm458_vm0, %v2268_v11 }
  0xd5   : > { %v1892_v16 = vpop.f32.mrf.mxu0 }
  0xd6   : > { %v605_v17 = vmin.f32 %v1892_v16, 0.0  ;;  %v597_v43 = vadd.f32 1.0, %v1892_v16  ;;  %vm589_vm2 = vcmp.gt.f32.partialorder %v1892_v16, 0.0 }
  0xd7   : > { %v549_v18 = vpop.f32.mrf.mxu0 }
  0xd8   : > { %v614_v19 = vmul.f32 1.442695, %v605_v17  ;;  %v604_v20 = vmin.f32 %v549_v18, 0.0  ;;  %v596_v41 = vadd.f32 1.0, %v549_v18  ;;  %vm588_vm1 = vcmp.gt.f32.partialorder %v549_v18, 0.0  ;;  %v833_v17 = vld [vmem:[%s2551_s3] sm:$0xff] }
  0xd9   : > { %v1895_v21 = vpop.f32.mrf.mxu0  ;;  %1928 = vmatprep.subr.mxu0 %v833_v17 }
  0xda   : > { %v612_v22 = vmul.f32 1.442695, %v604_v20  ;;  %2035 = vpow2.f32 %v614_v19  ;;  %v607_v23 = vmin.f32 %v1895_v21, 0.0  ;;  %v599_v49 = vadd.f32 1.0, %v1895_v21  ;;  %1929 = vmatpush3.msra.mxu0 %v833_v17 }
  0xdb   : > { %v559_v24 = vpop.f32.mrf.mxu0  ;;  %vm591_vm4 = vcmp.gt.f32.partialorder %v1895_v21, 0.0 }
  0xdc   : > { %2037 = vpow2.f32 %v612_v22  ;;  %v606_v25 = vmin.f32 %v559_v24, 0.0  ;;  %v618_v26 = vmul.f32 1.442695, %v607_v23  ;;  %v598_v47 = vadd.f32 1.0, %v559_v24 }
  0xdd   : > { %v1898_v27 = vpop.f32.mrf.mxu0  ;;  %vm590_vm3 = vcmp.gt.f32.partialorder %v559_v24, 0.0 }
  0xde   : > { %v616_v28 = vmul.f32 1.442695, %v606_v25  ;;  %v609_v29 = vmin.f32 %v1898_v27, 0.0  ;;  %2039 = vpow2.f32 %v618_v26  ;;  %v601_v55 = vadd.f32 1.0, %v1898_v27 }
  0xdf   : > { %v569_v30 = vpop.f32.mrf.mxu0  ;;  %vm593_vm6 = vcmp.gt.f32.partialorder %v1898_v27, 0.0 }
  0xe0   : > { %2041 = vpow2.f32 %v616_v28  ;;  %v622_v31 = vmul.f32 1.442695, %v609_v29  ;;  %v608_v32 = vmin.f32 %v569_v30, 0.0  ;;  %v600_v53 = vadd.f32 1.0, %v569_v30 }
  0xe1   : > { %v1901_v33 = vpop.f32.mrf.mxu0  ;;  %vm592_vm5 = vcmp.gt.f32.partialorder %v569_v30, 0.0 }
  0xe2   : > { %v611_v34 = vmin.f32 %v1901_v33, 0.0  ;;  %v620_v35 = vmul.f32 1.442695, %v608_v32  ;;  %2043 = vpow2.f32 %v622_v31  ;;  %v603_v61 = vadd.f32 1.0, %v1901_v33 }
  0xe3   : > { %v579_v36 = vpop.f32.mrf.mxu0  ;;  %vm595_vm8 = vcmp.gt.f32.partialorder %v1901_v33, 0.0 }
  0xe4   : > { %v626_v37 = vmul.f32 1.442695, %v611_v34  ;;  %v610_v38 = vmin.f32 %v579_v36, 0.0  ;;  %2045 = vpow2.f32 %v620_v35  ;;  %v602_v58 = vadd.f32 1.0, %v579_v36 }
  0xe5   : > { %vm594_vm7 = vcmp.gt.f32.partialorder %v579_v36, 0.0 }
  0xe6   : > { %v624_v39 = vmul.f32 1.442695, %v610_v38  ;;  %2047 = vpow2.f32 %v626_v37 }
  0xe7   : > { %v2036_v40 = vpop.eup %2035 }
  0xe8   : > { %2049 = vpow2.f32 %v624_v39  ;;  %v629_v45 = vsel %vm589_vm2, %v597_v43, %v2036_v40 }
  0xe9   : > { %v2038_v42 = vpop.eup %2037 }
  0xea   : > { %v628_v44 = vsel %vm588_vm1, %v596_v41, %v2038_v42 }
  0xeb   : > { %1910 = vmatprep.mubr.msk.f32.mxu1 %vm458_vm0, %v628_v44  ;;  %v2040_v46 = vpop.eup %2039 }
  0xec   : > { %1911 = vmatmul.mubr.msk.f32.vlgmr.msra.gmra.mxu1 %vm458_vm0, %v629_v45  ;;  %v631_v51 = vsel %vm591_vm4, %v599_v49, %v2040_v46 }
  0xed   : > { %v2042_v48 = vpop.eup %2041 }
  0xee   : > { %v630_v50 = vsel %vm590_vm3, %v598_v47, %v2042_v48 }
  0xef   : > { %1913 = vmatprep.mubr.msk.f32.mxu1 %vm458_vm0, %v630_v50  ;;  %v2044_v52 = vpop.eup %2043 }
  0xf0   : > { %1914 = vmatmul.mubr.msk.f32.gmra.mxu1 %vm458_vm0, %v631_v51  ;;  %v633_v59 = vsel %vm593_vm6, %v601_v55, %v2044_v52 }
  0xf1   : > { %v2046_v54 = vpop.eup %2045 }
  0xf2   : > { %v632_v56 = vsel %vm592_vm5, %v600_v53, %v2046_v54 }
  0xf3   : > { %v2048_v57 = vpop.eup %2047  ;;  %1916 = vmatprep.mubr.msk.f32.mxu1 %vm458_vm0, %v632_v56 }
  0xf4   : > { %1917 = vmatmul.mubr.msk.f32.gmra.mxu1 %vm458_vm0, %v633_v59  ;;  %v635_v63 = vsel %vm595_vm8, %v603_v61, %v2048_v57 }
  0xf5   : > { %v2050_v60 = vpop.eup %2049 }
  0xf6   : > { %v634_v62 = vsel %vm594_vm7, %v602_v58, %v2050_v60 }
  0xf7   : > { %1919 = vmatprep.mubr.msk.f32.mxu1 %vm458_vm0, %v634_v62 }
  0xf8   : > { %1920 = vmatmul.mubr.msk.f32.gmra.mxu1 %vm458_vm0, %v635_v63 }
 0x1ac   : > { %v1912_v3 = vpop.f32.mrf.mxu1 }
 0x1ad   : > { %v770_v14 = vadd.f32 1.5625e-08, %v1912_v3 }
 0x1ae   : > { %v730_v12 = vpop.f32.mrf.mxu1 }
 0x1af   : > { %v769_v13 = vadd.f32 1.5625e-08, %v730_v12 }
 0x1b0   : > { %v1915_v15 = vpop.f32.mrf.mxu1 }
 0x1b1   : > { %2051 = vrcp.f32 %v769_v13  ;;  %v772_v19 = vadd.f32 1.5625e-08, %v1915_v15 }
 0x1b2   : > { %v740_v16 = vpop.f32.mrf.mxu1  ;;  %2053 = vrcp.f32 %v770_v14 }
 0x1b3   : > { %v771_v18 = vadd.f32 1.5625e-08, %v740_v16 }
 0x1b4   : > { %v1918_v20 = vpop.f32.mrf.mxu1 }
 0x1b5   : > { %2055 = vrcp.f32 %v771_v18  ;;  %v774_v23 = vadd.f32 1.5625e-08, %v1918_v20 }
 0x1b6   : > { %v750_v21 = vpop.f32.mrf.mxu1  ;;  %2057 = vrcp.f32 %v772_v19 }
 0x1b7   : > { %v773_v22 = vadd.f32 1.5625e-08, %v750_v21 }
 0x1b8   : > { %v1921_v24 = vpop.f32.mrf.mxu1 }
 0x1b9   : > { %2059 = vrcp.f32 %v773_v22  ;;  %v776_v27 = vadd.f32 1.5625e-08, %v1921_v24 }
 0x1ba   : > { %v760_v25 = vpop.f32.mrf.mxu1  ;;  %2061 = vrcp.f32 %v774_v23 }
 0x1bb   : > { %v775_v26 = vadd.f32 1.5625e-08, %v760_v25 }
 0x1bd   : > { %2063 = vrcp.f32 %v775_v26 }
 0x1be   : > { %v2052_v28 = vpop.eup %2051  ;;  %2065 = vrcp.f32 %v776_v27 }
 0x1bf   : > { %801 = vrot.lane.b32.xlu0 %v2052_v28, %s2131_s12  ;;  %v2054_v29 = vpop.eup %2053 }
 0x1c2   : > { %v2056_v30 = vpop.eup %2055 }
 0x1c3   : > { %803 = vrot.lane.b32.xlu0 %v2054_v29, %s2131_s12  ;;  %805 = vrot.lane.b32.xlu1 %v2056_v30, %s2131_s12  ;;  %v2058_v31 = vpop.eup %2057 }
 0x1c6   : > { %v2060_v32 = vpop.eup %2059 }
 0x1c7   : > { %807 = vrot.lane.b32.xlu1 %v2058_v31, %s2131_s12  ;;  %809 = vrot.lane.b32.xlu0 %v2060_v32, %s2131_s12  ;;  %v2062_v33 = vpop.eup %2061 }
 0x1ca   : > { %v2064_v34 = vpop.eup %2063 }
 0x1cb   : > { %811 = vrot.lane.b32.xlu1 %v2062_v33, %s2131_s12  ;;  %813 = vrot.lane.b32.xlu0 %v2064_v34, %s2131_s12  ;;  %v2066_v35 = vpop.eup %2065 }
 0x1cf   : > { %815 = vrot.lane.b32.xlu1 %v2066_v35, %s2131_s12 }
 0x231   : > { %v802_v36 = vpop.permute.xlu0 %801 }
 0x232   : > { %v825_v37 = vmul.f32 %v802_v36, %v730_v12 }
 0x234   : > { %1930 = vmatprep.mubr.msk.f32.mxu0 %vm458_vm0, %v825_v37 }
 0x235   : > { %v804_v38 = vpop.permute.xlu0 %803  ;;  %v806_v39 = vpop.permute.xlu1 %805 }
 0x236   : > { %v826_v40 = vmul.f32 %v1912_v3, %v804_v38  ;;  %v827_v41 = vmul.f32 %v806_v39, %v740_v16 }
 0x238   : > { %1931 = vmatmul.mubr.msk.f32.vlgmr.msra.gmra.mxu0 %vm458_vm0, %v826_v40 }
 0x239   : > { %1933 = vmatprep.mubr.msk.f32.mxu0 %vm458_vm0, %v827_v41  ;;  %v808_v42 = vpop.permute.xlu1 %807  ;;  %v810_v44 = vpop.permute.xlu0 %809 }
 0x23a   : > { %v828_v43 = vmul.f32 %v1915_v15, %v808_v42  ;;  %v829_v45 = vmul.f32 %v810_v44, %v750_v21 }
 0x23c   : > { %1934 = vmatmul.mubr.msk.f32.gmra.mxu0 %vm458_vm0, %v828_v43 }
 0x23d   : > { %v812_v46 = vpop.permute.xlu1 %811  ;;  %1936 = vmatprep.mubr.msk.f32.mxu0 %vm458_vm0, %v829_v45  ;;  %v814_v48 = vpop.permute.xlu0 %813 }
 0x23e   : > { %v830_v47 = vmul.f32 %v1918_v20, %v812_v46  ;;  %v831_v49 = vmul.f32 %v814_v48, %v760_v25 }
 0x240   : > { %1937 = vmatmul.mubr.msk.f32.gmra.mxu0 %vm458_vm0, %v830_v47 }
 0x241   : > { %v816_v50 = vpop.permute.xlu1 %815  ;;  %1939 = vmatprep.mubr.msk.f32.mxu0 %vm458_vm0, %v831_v49 }
 0x242   : > { %v832_v51 = vmul.f32 %v1921_v24, %v816_v50 }
 0x244   : > { %1940 = vmatmul.mubr.msk.f32.gmra.mxu0 %vm458_vm0, %v832_v51  ;;  %v1108_v51 = vld [vmem:[%s2553_s5 + $0x18] sm:$0xff] }
 0x245   : > { %1970 = vmatprep.mubr.msk.f32.mxu0 %vm458_vm0, %v2233_v4  ;;  %1942 = vmatprep.subr.mxu1 %v1108_v51 }
 0x246   : > { %1943 = vmatpush3.msra.mxu1 %v1108_v51 }
 0x2f8   : > { %v1932_v52 = vpop.f32.mrf.mxu0 }
 0x2f9   : > { %v971_v53 = vsel %vm458_vm0, %v1932_v52, 0.0 }
 0x2fa   : > { %v927_v54 = vpop.f32.mrf.mxu0  ;;  %972 = vadd.xlane.f32.xlu1 %v971_v53  ;;  %v1107_v53 = vld [vmem:[%s2553_s5 + $0x10] sm:$0xff] }
 0x2fb   : > { %v968_v55 = vsel %vm458_vm0, %v927_v54, 0.0  ;;  %1944 = vmatprep.subr.mxu1 %v1107_v53 }
 0x2fc   : > { %v1935_v56 = vpop.f32.mrf.mxu0  ;;  %969 = vadd.xlane.f32.xlu0 %v968_v55  ;;  %v1106_v55 = vld [vmem:[%s2553_s5 + $0x8] sm:$0xff]  ;;  %1945 = vmatpush3.msra.mxu1 %v1107_v53 }
 0x2fd   : > { %v977_v62 = vsel %vm458_vm0, %v1935_v56, 0.0  ;;  %1946 = vmatprep.subr.mxu1 %v1106_v55 }
 0x2fe   : > { %v937_v57 = vpop.f32.mrf.mxu0  ;;  %1947 = vmatpush3.msra.mxu1 %v1106_v55 }
 0x2ff   : > { %v974_v58 = vsel %vm458_vm0, %v937_v57, 0.0 }
 0x300   : > { %v1938_v59 = vpop.f32.mrf.mxu0  ;;  %975 = vadd.xlane.f32.xlu0 %v974_v58  ;;  %v1101_v58 = vld [vmem:[%s2552_s4] sm:$0xff] }
 0x301   : > { %v983_v0 = vsel %vm458_vm0, %v1938_v59, 0.0 }
 0x302   : > { %v947_v60 = vpop.f32.mrf.mxu0 }
 0x303   : > { %v980_v61 = vsel %vm458_vm0, %v947_v60, 0.0 }
 0x304   : > { %981 = vadd.xlane.f32.xlu1 %v980_v61  ;;  %978 = vadd.xlane.f32.xlu0 %v977_v62  ;;  %v1941_v4 = vpop.f32.mrf.mxu0 }
 0x305   : > { %v989_v2 = vsel %vm458_vm0, %v1941_v4, 0.0 }
 0x306   : > { %v957_v63 = vpop.f32.mrf.mxu0 }
 0x307   : > { %v986_v1 = vsel %vm458_vm0, %v957_v63, 0.0 }
 0x308   : > { %984 = vadd.xlane.f32.xlu0 %v983_v0  ;;  %987 = vadd.xlane.f32.xlu1 %v986_v1 }
 0x30c   : > { %990 = vadd.xlane.f32.xlu0 %v989_v2 }
 0x383   : > { %v973_v3 = vpop.xlane.xlu1 %972 }
 0x384   : > { %v994_v12 = vmul.f32 0.03125, %v973_v3 }
 0x385   : > { %v970_v13 = vpop.xlane.xlu0 %969 }
 0x386   : > { %v2314_v14 = vsub.f32 %v1932_v52, %v994_v12  ;;  %v993_v15 = vmul.f32 0.03125, %v970_v13  ;;  %v1104_v52 = vld [vmem:[%s2552_s4 + $0x18] sm:$0xff] }
 0x387   : > { %1962 = vmatprep.subr.mxu0 %v1104_v52 }
 0x388   : > { %v2316_v16 = vsub.f32 %v927_v54, %v993_v15  ;;  %v1010_v17 = vmul.f32 %v2314_v14, %v2314_v14  ;;  %v1103_v54 = vld [vmem:[%s2552_s4 + $0x10] sm:$0xff]  ;;  %1963 = vmatpush3.msra.mxu0 %v1104_v52 }
 0x389   : > { %v976_v18 = vpop.xlane.xlu0 %975  ;;  %1964 = vmatprep.subr.mxu0 %v1103_v54 }
 0x38a   : > { %v995_v19 = vmul.f32 0.03125, %v976_v18  ;;  %v1020_v20 = vsel %vm458_vm0, %v1010_v17, 0.0  ;;  %v1009_v21 = vmul.f32 %v2316_v16, %v2316_v16  ;;  %1965 = vmatpush3.msra.mxu0 %v1103_v54 }
 0x38b   : > { %1021 = vadd.xlane.f32.xlu0 %v1020_v20 }
 0x38c   : > { %v2323_v22 = vsub.f32 %v937_v57, %v995_v19  ;;  %v1017_v23 = vsel %vm458_vm0, %v1009_v21, 0.0  ;;  %v1105_v57 = vld [vmem:[%s2553_s5] sm:$0xff] }
 0x38d   : > { %v982_v24 = vpop.xlane.xlu1 %981  ;;  %1018 = vadd.xlane.f32.xlu1 %v1017_v23  ;;  %v979_v25 = vpop.xlane.xlu0 %978  ;;  %1948 = vmatprep.subr.mxu1 %v1105_v57  ;;  %v1773_v21 = vld [vmem:[%s2555_s7] ss:$0 sm:$0xff] }
 0x38e   : > { %v997_v26 = vmul.f32 0.03125, %v982_v24  ;;  %v996_v27 = vmul.f32 0.03125, %v979_v25  ;;  %v1011_v28 = vmul.f32 %v2323_v22, %v2323_v22  ;;  %1949 = vmatpush3.msra.mxu1 %v1105_v57 }
 0x390   : > { %v2328_v29 = vsub.f32 %v947_v60, %v997_v26  ;;  %v2330_v30 = vsub.f32 %v1935_v56, %v996_v27  ;;  %v1023_v31 = vsel %vm458_vm0, %v1011_v28, 0.0  ;;  %v1102_v56 = vld [vmem:[%s2552_s4 + $0x8] sm:$0xff] }
 0x391   : > { %v988_v32 = vpop.xlane.xlu1 %987  ;;  %1024 = vadd.xlane.f32.xlu1 %v1023_v31  ;;  %v985_v33 = vpop.xlane.xlu0 %984  ;;  %1966 = vmatprep.subr.mxu0 %v1102_v56  ;;  %v1774_v31 = vld [vmem:[%s2556_s8] ss:$0 sm:$0xff] }
 0x392   : > { %v999_v34 = vmul.f32 0.03125, %v988_v32  ;;  %v998_v35 = vmul.f32 0.03125, %v985_v33  ;;  %v1013_v36 = vmul.f32 %v2328_v29, %v2328_v29  ;;  %v1012_v37 = vmul.f32 %v2330_v30, %v2330_v30  ;;  %1967 = vmatpush3.msra.mxu0 %v1102_v56 }
 0x393   : > { %1968 = vmatprep.subr.mxu0 %v1101_v58 }
 0x394   : > { %v2337_v38 = vsub.f32 %v957_v63, %v999_v34  ;;  %v2339_v39 = vsub.f32 %v1938_v59, %v998_v35  ;;  %v1029_v40 = vsel %vm458_vm0, %v1013_v36, 0.0  ;;  %v1026_v41 = vsel %vm458_vm0, %v1012_v37, 0.0  ;;  %1969 = vmatpush3.msra.mxu0 %v1101_v58  ;;  %v1357_v37 = vld [vmem:[%s2554_s6 + $0x30] sm:$0xff] }
 0x395   : > { %1030 = vadd.xlane.f32.xlu1 %v1029_v40  ;;  %1027 = vadd.xlane.f32.xlu0 %v1026_v41  ;;  %v991_v42 = vpop.xlane.xlu0 %990 }
 0x396   : > { %v1000_v43 = vmul.f32 0.03125, %v991_v42  ;;  %v1015_v44 = vmul.f32 %v2337_v38, %v2337_v38  ;;  %v1014_v45 = vmul.f32 %v2339_v39, %v2339_v39  ;;  %1971 = vmatmul.mubr.msk.f32.vlgmr.msra.gmra.mxu0 %vm458_vm0, %v2236_v5  ;;  %v1358_v5 = vld [vmem:[%s2554_s6 + $0x38] sm:$0xff] }
 0x397   : > { %1973 = vmatprep.mubr.msk.f32.mxu0 %vm458_vm0, %v2241_v6  ;;  %1982 = vmatprep.subr.mxu1 %v1358_v5 }
 0x398   : > { %v2347_v46 = vsub.f32 %v1941_v4, %v1000_v43  ;;  %v1035_v47 = vsel %vm458_vm0, %v1015_v44, 0.0  ;;  %v1032_v48 = vsel %vm458_vm0, %v1014_v45, 0.0  ;;  %v1355_v45 = vld [vmem:[%s2554_s6 + $0x20] sm:$0xff] }
 0x399   : > { %1036 = vadd.xlane.f32.xlu1 %v1035_v47  ;;  %1033 = vadd.xlane.f32.xlu0 %v1032_v48 }
 0x39a   : > { %v1016_v49 = vmul.f32 %v2347_v46, %v2347_v46  ;;  %1974 = vmatmul.mubr.msk.f32.gmra.mxu0 %vm458_vm0, %v2248_v7 }
 0x39b   : > { %1976 = vmatprep.mubr.msk.f32.mxu0 %vm458_vm0, %v2251_v8 }
 0x39c   : > { %v1038_v50 = vsel %vm458_vm0, %v1016_v49, 0.0 }
 0x39d   : > { %1039 = vadd.xlane.f32.xlu0 %v1038_v50 }
 0x39e   : > { %1977 = vmatmul.mubr.msk.f32.gmra.mxu0 %vm458_vm0, %v2258_v9 }
 0x39f   : > { %1979 = vmatprep.mubr.msk.f32.mxu0 %vm458_vm0, %v2261_v10 }
 0x3a2   : > { %1980 = vmatmul.mubr.msk.f32.gmra.mxu0 %vm458_vm0, %v2268_v11 }
 0x414   : > { %v1022_v6 = vpop.xlane.xlu0 %1021 }
 0x415   : > { %v1042_v59 = vmul.f32 0.03125, %v1022_v6  ;;  %v1351_v6 = vld [vmem:[%s2554_s6] sm:$0xff] }
 0x416   : > { %v1019_v7 = vpop.xlane.xlu1 %1018 }
 0x417   : > { %v1050_v60 = vadd.f32 1e-05, %v1042_v59  ;;  %v1041_v61 = vmul.f32 0.03125, %v1019_v7 }
 0x419   : > { %2067 = vrsqrt.f32 %v1050_v60  ;;  %v1049_v8 = vadd.f32 1e-05, %v1041_v61 }
 0x41a   : > { %v1025_v62 = vpop.xlane.xlu1 %1024 }
 0x41b   : > { %2069 = vrsqrt.f32 %v1049_v8  ;;  %v1043_v9 = vmul.f32 0.03125, %v1025_v62 }
 0x41d   : > { %v1051_v4 = vadd.f32 1e-05, %v1043_v9 }
 0x41e   : > { %v1031_v10 = vpop.xlane.xlu1 %1030  ;;  %v1028_v63 = vpop.xlane.xlu0 %1027 }
 0x41f   : > { %2071 = vrsqrt.f32 %v1051_v4  ;;  %v1045_v11 = vmul.f32 0.03125, %v1031_v10  ;;  %v1044_v0 = vmul.f32 0.03125, %v1028_v63 }
 0x421   : > { %v1053_v1 = vadd.f32 1e-05, %v1045_v11  ;;  %v1052_v2 = vadd.f32 1e-05, %v1044_v0 }
 0x422   : > { %v1037_v3 = vpop.xlane.xlu1 %1036  ;;  %v1034_v12 = vpop.xlane.xlu0 %1033 }
 0x423   : > { %2073 = vrsqrt.f32 %v1053_v1  ;;  %v1047_v13 = vmul.f32 0.03125, %v1037_v3  ;;  %v1046_v15 = vmul.f32 0.03125, %v1034_v12 }
 0x424   : > { %2075 = vrsqrt.f32 %v1052_v2 }
 0x425   : > { %v1055_v17 = vadd.f32 1e-05, %v1047_v13  ;;  %v1054_v18 = vadd.f32 1e-05, %v1046_v15 }
 0x426   : > { %v2068_v19 = vpop.eup %2067  ;;  %v1040_v20 = vpop.xlane.xlu0 %1039 }
 0x427   : > { %v1066_v23 = vmul.f32 %v2068_v19, %v2314_v14  ;;  %2077 = vrsqrt.f32 %v1055_v17  ;;  %v1048_v24 = vmul.f32 0.03125, %v1040_v20 }
 0x428   : > { %v2070_v25 = vpop.eup %2069  ;;  %2079 = vrsqrt.f32 %v1054_v18 }
 0x429   : > { %v1056_v26 = vadd.f32 1e-05, %v1048_v24  ;;  %v1065_v27 = vmul.f32 %v2070_v25, %v2316_v16  ;;  %v1080_v28 = vmul.f32 %v1773_v21, %v1066_v23 }
 0x42b   : > { %2081 = vrsqrt.f32 %v1056_v26  ;;  %v1079_v32 = vmul.f32 %v1773_v21, %v1065_v27  ;;  %v1094_v36 = vadd.f32 %v1774_v31, %v1080_v28 }
 0x42c   : > { %v2072_v33 = vpop.eup %2071 }
 0x42d   : > { %v1093_v34 = vadd.f32 %v1774_v31, %v1079_v32  ;;  %v1067_v35 = vmul.f32 %v2072_v33, %v2323_v22  ;;  %v1356_v22 = vld [vmem:[%s2554_s6 + $0x28] sm:$0xff] }
 0x42f   : > { %1950 = vmatprep.mubr.msk.f32.mxu1 %vm458_vm0, %v1093_v34  ;;  %v1081_v14 = vmul.f32 %v1773_v21, %v1067_v35 }
 0x430   : > { %v2074_v16 = vpop.eup %2073  ;;  %1951 = vmatmul.mubr.msk.f32.vlgmr.msra.gmra.mxu1 %vm458_vm0, %v1094_v36 }
 0x431   : > { %v2076_v40 = vpop.eup %2075  ;;  %v1095_v41 = vadd.f32 %v1774_v31, %v1081_v14  ;;  %v1069_v42 = vmul.f32 %v2074_v16, %v2328_v29  ;;  %1983 = vmatpush3.msra.mxu1 %v1358_v5  ;;  %v1353_v5 = vld [vmem:[%s2554_s6 + $0x10] sm:$0xff] }
 0x432   : > { %v1068_v43 = vmul.f32 %v2076_v40, %v2330_v30  ;;  %1984 = vmatprep.subr.mxu1 %v1357_v37 }
 0x433   : > { %1953 = vmatprep.mubr.msk.f32.mxu1 %vm458_vm0, %v1095_v41  ;;  %v1083_v44 = vmul.f32 %v1773_v21, %v1069_v42  ;;  %1985 = vmatpush3.msra.mxu1 %v1357_v37 }
 0x434   : > { %v2078_v47 = vpop.eup %2077  ;;  %v1082_v48 = vmul.f32 %v1773_v21, %v1068_v43  ;;  %1986 = vmatprep.subr.mxu1 %v1356_v22 }
 0x435   : > { %v2080_v29 = vpop.eup %2079  ;;  %v1097_v49 = vadd.f32 %v1774_v31, %v1083_v44  ;;  %v1071_v50 = vmul.f32 %v2078_v47, %v2337_v38  ;;  %1987 = vmatpush3.msra.mxu1 %v1356_v22 }
 0x436   : > { %v1096_v51 = vadd.f32 %v1774_v31, %v1082_v48  ;;  %v1070_v30 = vmul.f32 %v2080_v29, %v2339_v39  ;;  %1988 = vmatprep.subr.mxu1 %v1355_v45  ;;  %v1354_v39 = vld [vmem:[%s2554_s6 + $0x18] sm:$0xff] }
 0x437   : > { %v1085_v52 = vmul.f32 %v1773_v21, %v1071_v50  ;;  %1989 = vmatpush3.msra.mxu1 %v1355_v45 }
 0x438   : > { %v2082_v53 = vpop.eup %2081  ;;  %1954 = vmatmul.mubr.msk.f32.gmra.mxu1 %vm458_vm0, %v1096_v51  ;;  %v1084_v54 = vmul.f32 %v1773_v21, %v1070_v30  ;;  %1990 = vmatprep.subr.mxu1 %v1354_v39 }
 0x439   : > { %1956 = vmatprep.mubr.msk.f32.mxu1 %vm458_vm0, %v1097_v49  ;;  %v1099_v55 = vadd.f32 %v1774_v31, %v1085_v52  ;;  %v1072_v56 = vmul.f32 %v2082_v53, %v2347_v46  ;;  %1991 = vmatpush3.msra.mxu1 %v1354_v39  ;;  %v1352_v46 = vld [vmem:[%s2554_s6 + $0x8] sm:$0xff] }
 0x43a   : > { %v1098_v57 = vadd.f32 %v1774_v31, %v1084_v54  ;;  %1992 = vmatprep.subr.mxu1 %v1353_v5 }
 0x43b   : > { %v1086_v58 = vmul.f32 %v1773_v21, %v1072_v56  ;;  %1993 = vmatpush3.msra.mxu1 %v1353_v5 }
 0x43c   : > { %1957 = vmatmul.mubr.msk.f32.gmra.mxu1 %vm458_vm0, %v1098_v57  ;;  %1994 = vmatprep.subr.mxu1 %v1352_v46 }
 0x43d   : > { %1959 = vmatprep.mubr.msk.f32.mxu1 %vm458_vm0, %v1099_v55  ;;  %v1100_v38 = vadd.f32 %v1774_v31, %v1086_v58  ;;  %1995 = vmatpush3.msra.mxu1 %v1352_v46 }
 0x43e   : > { %1996 = vmatprep.subr.mxu1 %v1351_v6 }
 0x43f   : > { %1997 = vmatpush3.msra.mxu1 %v1351_v6 }
 0x440   : > { %1960 = vmatmul.mubr.msk.f32.gmra.mxu1 %vm458_vm0, %v1100_v38 }
 0x456   : > { %v1972_v59 = vpop.f32.mrf.mxu0 }
 0x458   : > { %v1304_v7 = vpop.f32.mrf.mxu0 }
 0x45a   : > { %v1975_v60 = vpop.f32.mrf.mxu0 }
 0x45c   : > { %v1314_v9 = vpop.f32.mrf.mxu0 }
 0x45e   : > { %v1978_v11 = vpop.f32.mrf.mxu0 }
 0x460   : > { %v1324_v3 = vpop.f32.mrf.mxu0 }
 0x462   : > { %v1981_v20 = vpop.f32.mrf.mxu0 }
 0x464   : > { %v1334_v27 = vpop.f32.mrf.mxu0 }
 0x4f0   : > { %v1952_v61 = vpop.f32.mrf.mxu1 }
 0x4f1   : > { %v1310_v8 = vadd.f32 %v1972_v59, %v1952_v61 }
 0x4f2   : > { %v1199_v62 = vpop.f32.mrf.mxu1 }
 0x4f3   : > { %v1305_v4 = vadd.f32 %v1304_v7, %v1199_v62  ;;  %v1344_v63 = vmax.f32 %v1310_v8, 0.0 }
 0x4f5   : > { %v1343_v10 = vmax.f32 %v1305_v4, 0.0 }
 0x4f7   : > { %1998 = vmatprep.mubr.msk.f32.mxu1 %vm1359_vm9, %v1343_v10 }
 0x4f8   : > { %v1955_v0 = vpop.f32.mrf.mxu1  ;;  %1999 = vmatmul.mubr.msk.f32.vlgmr.msra.gmra.mxu1 %vm1359_vm9, %v1344_v63 }
 0x4f9   : > { %v1320_v1 = vadd.f32 %v1975_v60, %v1955_v0 }
 0x4fa   : > { %v1209_v2 = vpop.f32.mrf.mxu1 }
 0x4fb   : > { %v1315_v12 = vadd.f32 %v1314_v9, %v1209_v2  ;;  %v1346_v17 = vmax.f32 %v1320_v1, 0.0 }
 0x4fc   : > { %v1958_v13 = vpop.f32.mrf.mxu1 }
 0x4fd   : > { %v1345_v15 = vmax.f32 %v1315_v12, 0.0  ;;  %v1330_v18 = vadd.f32 %v1978_v11, %v1958_v13 }
 0x4fe   : > { %v1219_v19 = vpop.f32.mrf.mxu1 }
 0x4ff   : > { %v1325_v21 = vadd.f32 %v1324_v3, %v1219_v19  ;;  %2001 = vmatprep.mubr.msk.f32.mxu1 %vm1359_vm9, %v1345_v15  ;;  %v1348_v25 = vmax.f32 %v1330_v18, 0.0 }
 0x500   : > { %v1961_v23 = vpop.f32.mrf.mxu1  ;;  %2002 = vmatmul.mubr.msk.f32.gmra.mxu1 %vm1359_vm9, %v1346_v17 }
 0x501   : > { %v1347_v24 = vmax.f32 %v1325_v21, 0.0  ;;  %v1340_v26 = vadd.f32 %v1981_v20, %v1961_v23 }
 0x502   : > { %v1229_v28 = vpop.f32.mrf.mxu1 }
 0x503   : > { %v1335_v31 = vadd.f32 %v1334_v27, %v1229_v28  ;;  %2004 = vmatprep.mubr.msk.f32.mxu1 %vm1359_vm9, %v1347_v24  ;;  %v1350_v33 = vmax.f32 %v1340_v26, 0.0 }
 0x504   : > { %2005 = vmatmul.mubr.msk.f32.gmra.mxu1 %vm1359_vm9, %v1348_v25 }
 0x505   : > { %v1349_v32 = vmax.f32 %v1335_v31, 0.0 }
 0x507   : > { %2007 = vmatprep.mubr.msk.f32.mxu1 %vm1359_vm9, %v1349_v32 }
 0x508   : > { %2008 = vmatmul.mubr.msk.f32.gmra.mxu1 %vm1359_vm9, %v1350_v33 }
 0x5b8   : > { %v2000_v34 = vpop.f32.mrf.mxu1 }
 0x5b9   : > { %v1494_v35 = vsel %vm458_vm0, %v2000_v34, 0.0 }
 0x5ba   : > { %1495 = vadd.xlane.f32.xlu0 %v1494_v35  ;;  %v1450_v36 = vpop.f32.mrf.mxu1 }
 0x5bb   : > { %v1491_v14 = vsel %vm458_vm0, %v1450_v36, 0.0 }
 0x5bc   : > { %1492 = vadd.xlane.f32.xlu1 %v1491_v14 }
 0x5c0   : > { %v2003_v37 = vpop.f32.mrf.mxu1 }
 0x5c1   : > { %v1500_v16 = vsel %vm458_vm0, %v2003_v37, 0.0 }
 0x5c2   : > { %1501 = vadd.xlane.f32.xlu0 %v1500_v16  ;;  %v1460_v40 = vpop.f32.mrf.mxu1 }
 0x5c3   : > { %v1497_v41 = vsel %vm458_vm0, %v1460_v40, 0.0 }
 0x5c4   : > { %1498 = vadd.xlane.f32.xlu1 %v1497_v41  ;;  %v2006_v42 = vpop.f32.mrf.mxu1 }
 0x5c5   : > { %v1506_v22 = vsel %vm458_vm0, %v2006_v42, 0.0 }
 0x5c6   : > { %1507 = vadd.xlane.f32.xlu0 %v1506_v22  ;;  %v1470_v43 = vpop.f32.mrf.mxu1 }
 0x5c7   : > { %v1503_v44 = vsel %vm458_vm0, %v1470_v43, 0.0 }
 0x5c8   : > { %1504 = vadd.xlane.f32.xlu1 %v1503_v44  ;;  %v2009_v45 = vpop.f32.mrf.mxu1 }
 0x5c9   : > { %v1512_v47 = vsel %vm458_vm0, %v2009_v45, 0.0 }
 0x5ca   : > { %1513 = vadd.xlane.f32.xlu0 %v1512_v47  ;;  %v1480_v48 = vpop.f32.mrf.mxu1  ;;  %v1799_v47 = vld [vmem:[%s2557_s9] ss:$0 sm:$0xff] }
 0x5cb   : > { %v1509_v29 = vsel %vm458_vm0, %v1480_v48, 0.0 }
 0x5cc   : > { %1510 = vadd.xlane.f32.xlu1 %v1509_v29 }
 0x643   : > { %v1496_v49 = vpop.xlane.xlu0 %1495 }
 0x644   : > { %v1516_v50 = vmul.f32 0.03125, %v1496_v49 }
 0x645   : > { %v1493_v51 = vpop.xlane.xlu1 %1492 }
 0x646   : > { %v2454_v30 = vsub.f32 %v2000_v34, %v1516_v50  ;;  %v1515_v52 = vmul.f32 0.03125, %v1493_v51 }
 0x648   : > { %v2456_v53 = vsub.f32 %v1450_v36, %v1515_v52  ;;  %v1532_v54 = vmul.f32 %v2454_v30, %v2454_v30  ;;  %v1800_v52 = vld [vmem:[%s2558_s10] ss:$0 sm:$0xff] }
 0x64a   : > { %v1542_v55 = vsel %vm458_vm0, %v1532_v54, 0.0  ;;  %v1531_v56 = vmul.f32 %v2456_v53, %v2456_v53 }
 0x64b   : > { %v1502_v57 = vpop.xlane.xlu0 %1501  ;;  %1543 = vadd.xlane.f32.xlu0 %v1542_v55 }
 0x64c   : > { %v1518_v58 = vmul.f32 0.03125, %v1502_v57  ;;  %v1539_v38 = vsel %vm458_vm0, %v1531_v56, 0.0 }
 0x64d   : > { %v1499_v39 = vpop.xlane.xlu1 %1498  ;;  %1540 = vadd.xlane.f32.xlu1 %v1539_v38 }
 0x64e   : > { %v2464_v5 = vsub.f32 %v2003_v37, %v1518_v58  ;;  %v1517_v46 = vmul.f32 0.03125, %v1499_v39 }
 0x64f   : > { %v1508_v6 = vpop.xlane.xlu0 %1507 }
 0x650   : > { %v2466_v59 = vsub.f32 %v1460_v40, %v1517_v46  ;;  %v1520_v7 = vmul.f32 0.03125, %v1508_v6  ;;  %v1534_v60 = vmul.f32 %v2464_v5, %v2464_v5 }
 0x651   : > { %v1505_v61 = vpop.xlane.xlu1 %1504 }
 0x652   : > { %v2470_v8 = vsub.f32 %v2006_v42, %v1520_v7  ;;  %v1519_v62 = vmul.f32 0.03125, %v1505_v61  ;;  %v1548_v9 = vsel %vm458_vm0, %v1534_v60, 0.0  ;;  %v1533_v4 = vmul.f32 %v2466_v59, %v2466_v59 }
 0x653   : > { %1549 = vadd.xlane.f32.xlu0 %v1548_v9  ;;  %v1514_v10 = vpop.xlane.xlu0 %1513 }
 0x654   : > { %v2475_v63 = vsub.f32 %v1470_v43, %v1519_v62  ;;  %v1522_v11 = vmul.f32 0.03125, %v1514_v10  ;;  %v1545_v0 = vsel %vm458_vm0, %v1533_v4, 0.0  ;;  %v1536_v1 = vmul.f32 %v2470_v8, %v2470_v8 }
 0x655   : > { %1546 = vadd.xlane.f32.xlu1 %v1545_v0  ;;  %v1511_v2 = vpop.xlane.xlu1 %1510 }
 0x656   : > { %v2480_v3 = vsub.f32 %v2009_v45, %v1522_v11  ;;  %v1521_v12 = vmul.f32 0.03125, %v1511_v2  ;;  %v1554_v13 = vsel %vm458_vm0, %v1536_v1, 0.0  ;;  %v1535_v15 = vmul.f32 %v2475_v63, %v2475_v63  ;;  %v2101_v1 = vld [vmem:[%s2230_s13 + $0x18] sm:$0xff] }
 0x657   : > { %1555 = vadd.xlane.f32.xlu0 %v1554_v13 }
 0x658   : > { %v2485_v17 = vsub.f32 %v1480_v48, %v1521_v12  ;;  %v1551_v18 = vsel %vm458_vm0, %v1535_v15, 0.0  ;;  %v1538_v19 = vmul.f32 %v2480_v3, %v2480_v3 }
 0x659   : > { %1552 = vadd.xlane.f32.xlu1 %v1551_v18 }
 0x65a   : > { %v1560_v20 = vsel %vm458_vm0, %v1538_v19, 0.0  ;;  %v1537_v21 = vmul.f32 %v2485_v17, %v2485_v17 }
 0x65b   : > { %1561 = vadd.xlane.f32.xlu0 %v1560_v20 }
 0x65c   : > { %v1557_v23 = vsel %vm458_vm0, %v1537_v21, 0.0 }
 0x65d   : > { %1558 = vadd.xlane.f32.xlu1 %v1557_v23  ;;  %v2103_v23 = vld [vmem:[%s2230_s13 + $0x28] sm:$0xff] }
 0x6d4   : > { %v1544_v24 = vpop.xlane.xlu0 %1543 }
 0x6d5   : > { %v1564_v25 = vmul.f32 0.03125, %v1544_v24 }
 0x6d6   : > { %v1541_v26 = vpop.xlane.xlu1 %1540 }
 0x6d7   : > { %v1572_v27 = vadd.f32 1e-05, %v1564_v25  ;;  %v1563_v28 = vmul.f32 0.03125, %v1541_v26 }
 0x6d9   : > { %2083 = vrsqrt.f32 %v1572_v27  ;;  %v1571_v31 = vadd.f32 1e-05, %v1563_v28  ;;  %v2104_v27 = vld [vmem:[%s2230_s13 + $0x20] sm:$0xff] }
 0x6db   : > { %2085 = vrsqrt.f32 %v1571_v31 }
 0x6dc   : > { %v1550_v32 = vpop.xlane.xlu0 %1549 }
 0x6dd   : > { %v1566_v33 = vmul.f32 0.03125, %v1550_v32 }
 0x6de   : > { %v1547_v34 = vpop.xlane.xlu1 %1546 }
 0x6df   : > { %v1574_v35 = vadd.f32 1e-05, %v1566_v33  ;;  %v1565_v36 = vmul.f32 0.03125, %v1547_v34 }
 0x6e0   : > { %v1556_v14 = vpop.xlane.xlu0 %1555 }
 0x6e1   : > { %2087 = vrsqrt.f32 %v1574_v35  ;;  %v1573_v37 = vadd.f32 1e-05, %v1565_v36  ;;  %v1568_v16 = vmul.f32 0.03125, %v1556_v14  ;;  %v2106_v35 = vld [vmem:[%s2230_s13 + $0x30] sm:$0xff] }
 0x6e2   : > { %v1553_v40 = vpop.xlane.xlu1 %1552 }
 0x6e3   : > { %2089 = vrsqrt.f32 %v1573_v37  ;;  %v1576_v41 = vadd.f32 1e-05, %v1568_v16  ;;  %v1567_v42 = vmul.f32 0.03125, %v1553_v40 }
 0x6e4   : > { %v1562_v22 = vpop.xlane.xlu0 %1561 }
 0x6e5   : > { %2091 = vrsqrt.f32 %v1576_v41  ;;  %v1575_v43 = vadd.f32 1e-05, %v1567_v42  ;;  %v1570_v44 = vmul.f32 0.03125, %v1562_v22 }
 0x6e6   : > { %v2084_v45 = vpop.eup %2083  ;;  %v1559_v48 = vpop.xlane.xlu1 %1558 }
 0x6e7   : > { %v1588_v29 = vmul.f32 %v2084_v45, %v2454_v30  ;;  %2093 = vrsqrt.f32 %v1575_v43  ;;  %v1578_v49 = vadd.f32 1e-05, %v1570_v44  ;;  %v1569_v50 = vmul.f32 0.03125, %v1559_v48  ;;  %v2099_v30 = vld [vmem:[%s2230_s13 + $0x8] sm:$0xff] }
 0x6e8   : > { %v2086_v51 = vpop.eup %2085 }
 0x6e9   : > { %v1602_v54 = vmul.f32 %v1799_v47, %v1588_v29  ;;  %v1587_v55 = vmul.f32 %v2086_v51, %v2456_v53  ;;  %2095 = vrsqrt.f32 %v1578_v49  ;;  %v1577_v56 = vadd.f32 1e-05, %v1569_v50  ;;  %v2100_v53 = vld [vmem:[%s2230_s13] sm:$0xff] }
 0x6eb   : > { %v1616_v57 = vadd.f32 %v1800_v52, %v1602_v54  ;;  %v1601_v58 = vmul.f32 %v1799_v47, %v1587_v55  ;;  %2097 = vrsqrt.f32 %v1577_v56 }
 0x6ed   : > { %v1624_v38 = vadd.f32 %v2099_v30, %v1616_v57  ;;  %v1615_v39 = vadd.f32 %v1800_v52, %v1601_v58 }
 0x6ee   : > { %v2088_v46 = vpop.eup %2087 }
 0x6ef   : > { %1632 = vst.msk [vmem:[%s2507_s21 + $0x8] sm:$0xff] %vm458_vm0, %v1624_v38  ;;  %v1623_v6 = vadd.f32 %v2100_v53, %v1615_v39  ;;  %v1590_v7 = vmul.f32 %v2088_v46, %v2464_v5 }
 0x6f0   : > { %v2090_v60 = vpop.eup %2089 }
 0x6f1   : > { %1631 = vst.msk [vmem:[%s2507_s21] sm:$0xff] %vm458_vm0, %v1623_v6  ;;  %v1604_v61 = vmul.f32 %v1799_v47, %v1590_v7  ;;  %v1589_v62 = vmul.f32 %v2090_v60, %v2466_v59  ;;  %v2102_v59 = vld [vmem:[%s2230_s13 + $0x10] sm:$0xff] }
 0x6f2   : > { %v2092_v9 = vpop.eup %2091 }
 0x6f3   : > { %v1618_v4 = vadd.f32 %v1800_v52, %v1604_v61  ;;  %v1603_v10 = vmul.f32 %v1799_v47, %v1589_v62  ;;  %v1592_v11 = vmul.f32 %v2092_v9, %v2470_v8 }
 0x6f4   : > { %v2094_v0 = vpop.eup %2093 }
 0x6f5   : > { %v1626_v2 = vadd.f32 %v2101_v1, %v1618_v4  ;;  %v1617_v12 = vadd.f32 %v1800_v52, %v1603_v10  ;;  %v1606_v5 = vmul.f32 %v1799_v47, %v1592_v11  ;;  %v1591_v13 = vmul.f32 %v2094_v0, %v2475_v63 }
 0x6f6   : > { %v2096_v15 = vpop.eup %2095 }
 0x6f7   : > { %1634 = vst.msk [vmem:[%s2507_s21 + $0x18] sm:$0xff] %vm458_vm0, %v1626_v2  ;;  %v1625_v18 = vadd.f32 %v2102_v59, %v1617_v12  ;;  %v1620_v19 = vadd.f32 %v1800_v52, %v1606_v5  ;;  %v1605_v20 = vmul.f32 %v1799_v47, %v1591_v13  ;;  %v1594_v8 = vmul.f32 %v2096_v15, %v2480_v3  ;;  %v2105_v3 = vld [vmem:[%s2230_s13 + $0x38] sm:$0xff] }
 0x6f8   : > { %v2098_v21 = vpop.eup %2097 }
 0x6f9   : > { %1633 = vst.msk [vmem:[%s2507_s21 + $0x10] sm:$0xff] %vm458_vm0, %v1625_v18  ;;  %v1628_v24 = vadd.f32 %v2103_v23, %v1620_v19  ;;  %v1619_v63 = vadd.f32 %v1800_v52, %v1605_v20  ;;  %v1608_v25 = vmul.f32 %v1799_v47, %v1594_v8  ;;  %v1593_v26 = vmul.f32 %v2098_v21, %v2485_v17 }
 0x6fb   : > { %1636 = vst.msk [vmem:[%s2507_s21 + $0x28] sm:$0xff] %vm458_vm0, %v1628_v24  ;;  %v1627_v28 = vadd.f32 %v2104_v27, %v1619_v63  ;;  %v1622_v31 = vadd.f32 %v1800_v52, %v1608_v25  ;;  %v1607_v32 = vmul.f32 %v1799_v47, %v1593_v26 }
 0x6fd   : > { %1635 = vst.msk [vmem:[%s2507_s21 + $0x20] sm:$0xff] %vm458_vm0, %v1627_v28  ;;  %v1630_v33 = vadd.f32 %v2105_v3, %v1622_v31  ;;  %v1621_v34 = vadd.f32 %v1800_v52, %v1607_v32 }
 0x6ff   : > { %1638 = vst.msk [vmem:[%s2507_s21 + $0x38] sm:$0xff] %vm458_vm0, %v1630_v33  ;;  %v1629_v36 = vadd.f32 %v2106_v35, %v1621_v34 }
 0x701   : > { %1637 = vst.msk [vmem:[%s2507_s21 + $0x30] sm:$0xff] %vm458_vm0, %v1629_v36 }
 0x702 PF: > { %s21_s19 = sadd.s32 1, %s2129_s19   ;;  %s2560_s17 = smov %s2125_s18 }
 0x703   : > { %p18_p5 = scmp.ge.s32.totalorder %s21_s19, 6   ;;  %s2561_s18 = smov %s2563_s20 }
 0x705   :  { %20 = sbr.rel (!%p18_p5) target bundleno = 2 (0x2), region = 97 }

</bundles_post_ra>
